<compile_context>
chip_gen: v6e
topology: v6e:2x2x1
jax: 0.10.0
libtpu: 0.0.40
codegen_flags: <defaults>
</compile_context>

<pallas_src>
import math
import functools

import jax
import jax.numpy as jnp
from jax.experimental import pallas as pl
from jax.experimental.pallas import tpu as pltpu


def _layer_norm(v, g, b, eps=1e-5):
    mu = jnp.mean(v, axis=-1, keepdims=True)
    c = v - mu
    var = jnp.mean(c * c, axis=-1, keepdims=True)
    return c * jax.lax.rsqrt(var + eps) * g + b


def _encoder_layer_kernel(num_heads, head_dim, one_sided_w,
                          x_ref, padbias_ref,
                          wq_ref, bq_ref, wk_ref, bk_ref, wv_ref, bv_ref,
                          ln1g_ref, ln1b_ref,
                          w1_ref, b1_ref, w2_ref, b2_ref,
                          ln2g_ref, ln2b_ref,
                          out_ref):
    x = x_ref[0]                                # (S, E) f32 activations for this batch
    pad_bias = padbias_ref[0]                   # (1, S) f32: 0 or -10000 per key
    S = x.shape[0]

    # --- QKV projections: bf16 MXU matmuls, f32 accumulation -------------------
    xb = x.astype(jnp.bfloat16)
    scale = 1.0 / math.sqrt(head_dim)
    q = (jnp.dot(xb, wq_ref[...], preferred_element_type=jnp.float32)
         + bq_ref[...]) * scale
    k = jnp.dot(xb, wk_ref[...], preferred_element_type=jnp.float32) + bk_ref[...]
    v = jnp.dot(xb, wv_ref[...], preferred_element_type=jnp.float32) + bv_ref[...]
    qb = q.astype(jnp.bfloat16)
    kb = k.astype(jnp.bfloat16)
    vb = v.astype(jnp.bfloat16)

    # --- banded attention in query chunks of 2w rows ---------------------------
    two_w = 2 * one_sided_w
    num_chunks = S // two_w
    chunk_outs = []
    for c in range(num_chunks):
        r0 = c * two_w                                  # first query row of chunk
        j0 = max(0, r0 - one_sided_w)                   # key window (static slice)
        j1 = min(S, r0 + two_w + one_sided_w)
        width = j1 - j0

        # band + padding bias for this chunk, built in registers (no HBM traffic)
        qi = jax.lax.broadcasted_iota(jnp.int32, (two_w, width), 0) + r0
        kj = jax.lax.broadcasted_iota(jnp.int32, (two_w, width), 1) + j0
        in_band = jnp.abs(qi - kj) <= one_sided_w
        cbias = jnp.where(in_band, pad_bias[:, j0:j1], jnp.float32(-1e9))

        qc = qb[r0:r0 + two_w, :]                       # (2w, E)
        kc = kb[j0:j1, :]                               # (width, E)
        vc = vb[j0:j1, :]

        head_outs = []
        for h in range(num_heads):
            sl = slice(h * head_dim, (h + 1) * head_dim)
            s = jax.lax.dot_general(qc[:, sl], kc[:, sl], (((1,), (1,)), ((), ())),
                                    preferred_element_type=jnp.float32) + cbias
            m = jnp.max(s, axis=-1, keepdims=True)
            p = jnp.exp(s - m)                          # unnormalized probs
            denom = jnp.sum(p, axis=-1, keepdims=True)
            o = jnp.dot(p.astype(jnp.bfloat16), vc[:, sl],
                        preferred_element_type=jnp.float32)
            # normalize after PV: S*head_dim multiplies + EUP approx reciprocal
            head_outs.append(o * pl.reciprocal(denom, approx=True))
        chunk_outs.append(jnp.concatenate(head_outs, axis=-1))   # (2w, E)

    attn = jnp.concatenate(chunk_outs, axis=0)                   # (S, E) lane-dense

    # dropout(p) is identity in eval mode; post-norm (encoder_normalize_before=False)
    y = _layer_norm(x + attn, ln1g_ref[...], ln1b_ref[...])

    # feed-forward: relu(y @ W1 + b1) @ W2 + b2, residual, final LayerNorm
    yb = y.astype(jnp.bfloat16)
    h1 = jnp.maximum(
        jnp.dot(yb, w1_ref[...], preferred_element_type=jnp.float32) + b1_ref[...],
        0.0)
    z = jnp.dot(h1.astype(jnp.bfloat16), w2_ref[...],
                preferred_element_type=jnp.float32) + b2_ref[...]

    out_ref[0] = _layer_norm(y + z, ln2g_ref[...], ln2b_ref[...])


def exp_longformer_encoder_layer(x_sbe, padding_mask, params, *,
                                 num_heads, attention_window):
    S, B, E = x_sbe.shape
    head_dim = E // num_heads
    w = attention_window // 2
    F = params["w1"].shape[1]
    assert S % (2 * w) == 0, "seq_len must be multiple of attention_window"
    assert num_heads * head_dim == E

    x = jnp.transpose(x_sbe, (1, 0, 2)).astype(jnp.float32)      # (B, S, E)

    # per-key additive padding bias only -- band mask is built inside the kernel
    pad_bias = jnp.where(padding_mask != 0, -10000.0, 0.0).astype(jnp.float32)
    pad_bias = pad_bias.reshape(B, 1, S)                         # (B, 1, S)

    # weights in bf16 (MXU-native, halves weight HBM/VMEM traffic); biases/LN in f32
    bf16 = lambda a: a.astype(jnp.bfloat16)
    wq, wk, wv = bf16(params["wq"]), bf16(params["wk"]), bf16(params["wv"])
    w1, w2 = bf16(params["w1"]), bf16(params["w2"])

    spec_full = lambda shape: pl.BlockSpec(shape, lambda b: (0, 0))
    kernel = functools.partial(_encoder_layer_kernel, num_heads, head_dim, w)

    # explicit VMEM budget: double-buffered activation blocks + weights + live
    # intermediates (q/k/v/h1), with a floor well above the toy footprint.
    vmem_limit = int(min(
        96 * (1 << 20),
        max(8 * (1 << 20),
            6 * S * E * 4
            + 2 * (3 * E * E + 2 * E * F) * 2
            + 4 * S * (E + F) * 4
            + (1 << 20))))

    out = pl.pallas_call(
        kernel,
        out_shape=jax.ShapeDtypeStruct((B, S, E), jnp.float32),
        grid_spec=pltpu.PrefetchScalarGridSpec(
            num_scalar_prefetch=0,
            grid=(B,),
            in_specs=[
                pl.BlockSpec((1, S, E), lambda b: (b, 0, 0)),    # x
                pl.BlockSpec((1, 1, S), lambda b: (b, 0, 0)),    # padding bias
                spec_full((E, E)), spec_full((1, E)),            # Wq, bq
                spec_full((E, E)), spec_full((1, E)),            # Wk, bk
                spec_full((E, E)), spec_full((1, E)),            # Wv, bv
                spec_full((1, E)), spec_full((1, E)),            # LN1 gamma, beta
                spec_full((E, F)), spec_full((1, F)),            # fc1
                spec_full((F, E)), spec_full((1, E)),            # fc2
                spec_full((1, E)), spec_full((1, E)),            # LN2 gamma, beta
            ],
            out_specs=pl.BlockSpec((1, S, E), lambda b: (b, 0, 0)),
        ),
        compiler_params=pltpu.CompilerParams(
            dimension_semantics=("parallel",),                   # v7x: 2 TCs
            vmem_limit_bytes=vmem_limit),
    )(x, pad_bias,
      wq, params["bq"], wk, params["bk"], wv, params["bv"],
      params["ln1_g"], params["ln1_b"],
      w1, params["b1"], w2, params["b2"],
      params["ln2_g"], params["ln2_b"])

    return jnp.transpose(out, (1, 0, 2))                         # back to (S, B, E)


def init_params(key, embed_dim, ffn_dim):
    """Deterministic synthetic init: xavier-uniform weights (stored as (in, out)),
    zero biases, LayerNorm gamma=1 / beta=0 (matches nn.LayerNorm defaults)."""
    def xavier(k, shape):
        fan_in, fan_out = shape
        lim = math.sqrt(6.0 / (fan_in + fan_out))
        return jax.random.uniform(k, shape, jnp.float32, -lim, lim)

    ks = jax.random.split(key, 5)
    return dict(
        wq=xavier(ks[0], (embed_dim, embed_dim)),
        bq=jnp.zeros((1, embed_dim), jnp.float32),
        wk=xavier(ks[1], (embed_dim, embed_dim)),
        bk=jnp.zeros((1, embed_dim), jnp.float32),
        wv=xavier(ks[2], (embed_dim, embed_dim)),
        bv=jnp.zeros((1, embed_dim), jnp.float32),
        ln1_g=jnp.ones((1, embed_dim), jnp.float32),
        ln1_b=jnp.zeros((1, embed_dim), jnp.float32),
        w1=xavier(ks[3], (embed_dim, ffn_dim)),
        b1=jnp.zeros((1, ffn_dim), jnp.float32),
        w2=xavier(ks[4], (ffn_dim, embed_dim)),
        b2=jnp.zeros((1, embed_dim), jnp.float32),
        ln2_g=jnp.ones((1, embed_dim), jnp.float32),
        ln2_b=jnp.zeros((1, embed_dim), jnp.float32),
    )


def reference(x_sbe, padding_mask, params, *, num_heads, attention_window):
    """Pure-JAX f32 reference with identical banded-attention semantics."""
    S, B, E = x_sbe.shape
    D = E // num_heads
    w = attention_window // 2
    x = jnp.transpose(x_sbe, (1, 0, 2)).astype(jnp.float32)
    q = ((x @ params["wq"] + params["bq"]) / math.sqrt(D)).reshape(B, S, num_heads, D)
    k = (x @ params["wk"] + params["bk"]).reshape(B, S, num_heads, D)
    v = (x @ params["wv"] + params["bv"]).reshape(B, S, num_heads, D)
    scores = jnp.einsum("bihd,bjhd->bhij", q, k)
    idx = jnp.arange(S)
    band = jnp.abs(idx[:, None] - idx[None, :]) <= w
    pad_bias = jnp.where(padding_mask != 0, -10000.0, 0.0)
    bias = jnp.where(band[None], pad_bias[:, None, :], -1e9)
    probs = jax.nn.softmax(scores + bias[:, None, :, :], axis=-1)
    attn = jnp.einsum("bhij,bjhd->bihd", probs, v).reshape(B, S, E)

    def ln(t, g, b):
        mu = t.mean(-1, keepdims=True)
        var = ((t - mu) ** 2).mean(-1, keepdims=True)
        return (t - mu) / jnp.sqrt(var + 1e-5) * g + b

    y = ln(x + attn, params["ln1_g"], params["ln1_b"])
    h1 = jnp.maximum(y @ params["w1"] + params["b1"], 0.0)
    z = h1 @ params["w2"] + params["b2"]
    return jnp.transpose(ln(y + z, params["ln2_g"], params["ln2_b"]), (1, 0, 2))


if __name__ == "__main__":
    # Small shapes consistent with the module: seq must be a multiple of attention_window.
    B, S, E, H, FFN, WIN = 2, 16, 32, 4, 64, 8
    key = jax.random.PRNGKey(0)
    kx, kp = jax.random.split(key, 2)

    x = jax.random.normal(kx, (S, B, E), jnp.float32)              # (seq, batch, embed)
    padding_mask = jnp.zeros((B, S), jnp.int32).at[1, -3:].set(1)  # 1 = padding

    params = init_params(kp, E, FFN)

    out = exp_longformer_encoder_layer(
        x, padding_mask, params, num_heads=H, attention_window=WIN)
    out = jax.block_until_ready(out)

    ref = reference(x, padding_mask, params, num_heads=H, attention_window=WIN)
    assert out.shape == (S, B, E)
    max_err = float(jnp.max(jnp.abs(out - ref)))
    # kernel runs all matmuls in bf16 (f32 accumulation); f32 reference tolerance
    if not (max_err < 5e-2):
        raise AssertionError(f"mismatch vs reference: max_err={max_err}")

    print("KERNEL_OK")
</pallas_src>

<mosaic_0001>
module attributes {stable_mosaic.version = 11 : i64} {
  func.func @_encoder_layer_kernel(%arg0: i32, %arg1: memref<1x16x32xf32, #tpu.memory_space<vmem>>, %arg2: memref<1x1x16xf32, #tpu.memory_space<vmem>>, %arg3: memref<32x32xbf16, #tpu.memory_space<vmem>>, %arg4: memref<1x32xf32, #tpu.memory_space<vmem>>, %arg5: memref<32x32xbf16, #tpu.memory_space<vmem>>, %arg6: memref<1x32xf32, #tpu.memory_space<vmem>>, %arg7: memref<32x32xbf16, #tpu.memory_space<vmem>>, %arg8: memref<1x32xf32, #tpu.memory_space<vmem>>, %arg9: memref<1x32xf32, #tpu.memory_space<vmem>>, %arg10: memref<1x32xf32, #tpu.memory_space<vmem>>, %arg11: memref<32x64xbf16, #tpu.memory_space<vmem>>, %arg12: memref<1x64xf32, #tpu.memory_space<vmem>>, %arg13: memref<64x32xbf16, #tpu.memory_space<vmem>>, %arg14: memref<1x32xf32, #tpu.memory_space<vmem>>, %arg15: memref<1x32xf32, #tpu.memory_space<vmem>>, %arg16: memref<1x32xf32, #tpu.memory_space<vmem>>, %arg17: memref<1x16x32xf32, #tpu.memory_space<vmem>>) attributes {dimension_semantics = [#tpu.dimension_semantics<parallel>], iteration_bounds = array<i64: 2>, scalar_prefetch = 0 : i64, scratch_operands = 0 : i64, tpu.core_type = #tpu.core_type<tc>, window_params = [{transform_indices = @transform_0, window_bounds = array<i64: 1, 16, 32>}, {transform_indices = @transform_1, window_bounds = array<i64: 1, 1, 16>}, {pipeline_mode = #tpu.pipeline_mode<synchronous>, transform_indices = @transform_2, window_bounds = array<i64: 32, 32>}, {pipeline_mode = #tpu.pipeline_mode<synchronous>, transform_indices = @transform_3, window_bounds = array<i64: 1, 32>}, {pipeline_mode = #tpu.pipeline_mode<synchronous>, transform_indices = @transform_4, window_bounds = array<i64: 32, 32>}, {pipeline_mode = #tpu.pipeline_mode<synchronous>, transform_indices = @transform_5, window_bounds = array<i64: 1, 32>}, {pipeline_mode = #tpu.pipeline_mode<synchronous>, transform_indices = @transform_6, window_bounds = array<i64: 32, 32>}, {pipeline_mode = #tpu.pipeline_mode<synchronous>, transform_indices = @transform_7, window_bounds = array<i64: 1, 32>}, {pipeline_mode = #tpu.pipeline_mode<synchronous>, transform_indices = @transform_8, window_bounds = array<i64: 1, 32>}, {pipeline_mode = #tpu.pipeline_mode<synchronous>, transform_indices = @transform_9, window_bounds = array<i64: 1, 32>}, {pipeline_mode = #tpu.pipeline_mode<synchronous>, transform_indices = @transform_10, window_bounds = array<i64: 32, 64>}, {pipeline_mode = #tpu.pipeline_mode<synchronous>, transform_indices = @transform_11, window_bounds = array<i64: 1, 64>}, {pipeline_mode = #tpu.pipeline_mode<synchronous>, transform_indices = @transform_12, window_bounds = array<i64: 64, 32>}, {pipeline_mode = #tpu.pipeline_mode<synchronous>, transform_indices = @transform_13, window_bounds = array<i64: 1, 32>}, {pipeline_mode = #tpu.pipeline_mode<synchronous>, transform_indices = @transform_14, window_bounds = array<i64: 1, 32>}, {pipeline_mode = #tpu.pipeline_mode<synchronous>, transform_indices = @transform_15, window_bounds = array<i64: 1, 32>}, {transform_indices = @transform_16, window_bounds = array<i64: 1, 16, 32>}]} {
    %c0 = arith.constant 0 : index
    %c0_0 = arith.constant 0 : index
    %c0_1 = arith.constant 0 : index
    %0 = vector.load %arg1[%c0, %c0_0, %c0_1] : memref<1x16x32xf32, #tpu.memory_space<vmem>>, vector<1x16x32xf32>
    %1 = vector.shape_cast %0 : vector<1x16x32xf32> to vector<16x32xf32>
    %c0_2 = arith.constant 0 : index
    %c0_3 = arith.constant 0 : index
    %c0_4 = arith.constant 0 : index
    %2 = vector.load %arg2[%c0_2, %c0_3, %c0_4] : memref<1x1x16xf32, #tpu.memory_space<vmem>>, vector<1x1x16xf32>
    %3 = vector.shape_cast %2 : vector<1x1x16xf32> to vector<1x16xf32>
    %4 = arith.truncf %1 : vector<16x32xf32> to vector<16x32xbf16>
    %c0_5 = arith.constant 0 : index
    %c0_6 = arith.constant 0 : index
    %5 = vector.load %arg3[%c0_5, %c0_6] : memref<32x32xbf16, #tpu.memory_space<vmem>>, vector<32x32xbf16>
    %cst = arith.constant dense<0.000000e+00> : vector<16x32xf32>
    %6 = tpu.matmul %4, %5, %cst {dimension_numbers = #tpu.dot_dimension_numbers<[1], [0], [0], [1], [0, 0, 1, 1], [], []>} : vector<16x32xbf16>, vector<32x32xbf16>, vector<16x32xf32> -> vector<16x32xf32>
    %c0_7 = arith.constant 0 : index
    %c0_8 = arith.constant 0 : index
    %7 = vector.load %arg4[%c0_7, %c0_8] : memref<1x32xf32, #tpu.memory_space<vmem>>, vector<1x32xf32>
    %8 = vector.broadcast %7 : vector<1x32xf32> to vector<16x32xf32>
    %9 = arith.addf %6, %8 : vector<16x32xf32>
    %cst_9 = arith.constant 0.353553385 : f32
    %10 = vector.broadcast %cst_9 : f32 to vector<16x32xf32>
    %11 = arith.mulf %9, %10 : vector<16x32xf32>
    %c0_10 = arith.constant 0 : index
    %c0_11 = arith.constant 0 : index
    %12 = vector.load %arg5[%c0_10, %c0_11] : memref<32x32xbf16, #tpu.memory_space<vmem>>, vector<32x32xbf16>
    %cst_12 = arith.constant dense<0.000000e+00> : vector<16x32xf32>
    %13 = tpu.matmul %4, %12, %cst_12 {dimension_numbers = #tpu.dot_dimension_numbers<[1], [0], [0], [1], [0, 0, 1, 1], [], []>} : vector<16x32xbf16>, vector<32x32xbf16>, vector<16x32xf32> -> vector<16x32xf32>
    %c0_13 = arith.constant 0 : index
    %c0_14 = arith.constant 0 : index
    %14 = vector.load %arg6[%c0_13, %c0_14] : memref<1x32xf32, #tpu.memory_space<vmem>>, vector<1x32xf32>
    %15 = vector.broadcast %14 : vector<1x32xf32> to vector<16x32xf32>
    %16 = arith.addf %13, %15 : vector<16x32xf32>
    %c0_15 = arith.constant 0 : index
    %c0_16 = arith.constant 0 : index
    %17 = vector.load %arg7[%c0_15, %c0_16] : memref<32x32xbf16, #tpu.memory_space<vmem>>, vector<32x32xbf16>
    %cst_17 = arith.constant dense<0.000000e+00> : vector<16x32xf32>
    %18 = tpu.matmul %4, %17, %cst_17 {dimension_numbers = #tpu.dot_dimension_numbers<[1], [0], [0], [1], [0, 0, 1, 1], [], []>} : vector<16x32xbf16>, vector<32x32xbf16>, vector<16x32xf32> -> vector<16x32xf32>
    %c0_18 = arith.constant 0 : index
    %c0_19 = arith.constant 0 : index
    %19 = vector.load %arg8[%c0_18, %c0_19] : memref<1x32xf32, #tpu.memory_space<vmem>>, vector<1x32xf32>
    %20 = vector.broadcast %19 : vector<1x32xf32> to vector<16x32xf32>
    %21 = arith.addf %18, %20 : vector<16x32xf32>
    %22 = arith.truncf %11 : vector<16x32xf32> to vector<16x32xbf16>
    %23 = arith.truncf %16 : vector<16x32xf32> to vector<16x32xbf16>
    %24 = arith.truncf %21 : vector<16x32xf32> to vector<16x32xbf16>
    %25 = tpu.iota {dimensions = array<i32: 0>} : vector<8x12xi32>
    %c0_i32 = arith.constant 0 : i32
    %26 = vector.broadcast %c0_i32 : i32 to vector<8x12xi32>
    %27 = arith.addi %25, %26 : vector<8x12xi32>
    %28 = tpu.iota {dimensions = array<i32: 1>} : vector<8x12xi32>
    %c0_i32_20 = arith.constant 0 : i32
    %29 = vector.broadcast %c0_i32_20 : i32 to vector<8x12xi32>
    %30 = arith.addi %28, %29 : vector<8x12xi32>
    %31 = arith.subi %27, %30 : vector<8x12xi32>
    %32 = math.absi %31 : vector<8x12xi32>
    %c4_i32 = arith.constant 4 : i32
    %33 = vector.broadcast %c4_i32 : i32 to vector<8x12xi32>
    %34 = arith.cmpi sle, %32, %33 : vector<8x12xi32>
    %35 = vector.extract_strided_slice %3 {offsets = [0, 0], sizes = [1, 12], strides = [1, 1]} : vector<1x16xf32> to vector<1x12xf32>
    %cst_21 = arith.constant -1.000000e+09 : f32
    %36 = vector.shape_cast %35 : vector<1x12xf32> to vector<1x12xf32>
    %37 = vector.broadcast %36 : vector<1x12xf32> to vector<8x12xf32>
    %38 = vector.broadcast %cst_21 : f32 to vector<8x12xf32>
    %39 = arith.select %34, %37, %38 : vector<8x12xi1>, vector<8x12xf32>
    %40 = vector.extract_strided_slice %22 {offsets = [0, 0], sizes = [8, 32], strides = [1, 1]} : vector<16x32xbf16> to vector<8x32xbf16>
    %41 = vector.extract_strided_slice %23 {offsets = [0, 0], sizes = [12, 32], strides = [1, 1]} : vector<16x32xbf16> to vector<12x32xbf16>
    %42 = vector.extract_strided_slice %24 {offsets = [0, 0], sizes = [12, 32], strides = [1, 1]} : vector<16x32xbf16> to vector<12x32xbf16>
    %43 = vector.extract_strided_slice %40 {offsets = [0, 0], sizes = [8, 8], strides = [1, 1]} : vector<8x32xbf16> to vector<8x8xbf16>
    %44 = vector.extract_strided_slice %41 {offsets = [0, 0], sizes = [12, 8], strides = [1, 1]} : vector<12x32xbf16> to vector<12x8xbf16>
    %cst_22 = arith.constant dense<0.000000e+00> : vector<8x12xf32>
    %45 = tpu.matmul %43, %44, %cst_22 {dimension_numbers = #tpu.dot_dimension_numbers<[1], [1], [0], [0], [0, 0, 1, 0], [], []>} : vector<8x8xbf16>, vector<12x8xbf16>, vector<8x12xf32> -> vector<8x12xf32>
    %46 = arith.addf %45, %39 : vector<8x12xf32>
    %cst_23 = arith.constant dense<0xFF800000> : vector<8xf32>
    %47 = vector.multi_reduction <maximumf>, %46, %cst_23 [1] : vector<8x12xf32> to vector<8xf32>
    %48 = vector.shape_cast %47 : vector<8xf32> to vector<8x1xf32>
    %49 = vector.broadcast %48 : vector<8x1xf32> to vector<8x12xf32>
    %50 = arith.subf %46, %49 : vector<8x12xf32>
    %51 = math.exp %50 : vector<8x12xf32>
    %cst_24 = arith.constant dense<0.000000e+00> : vector<8xf32>
    %52 = vector.multi_reduction <add>, %51, %cst_24 [1] : vector<8x12xf32> to vector<8xf32>
    %53 = vector.shape_cast %52 : vector<8xf32> to vector<8x1xf32>
    %54 = arith.truncf %51 : vector<8x12xf32> to vector<8x12xbf16>
    %55 = vector.extract_strided_slice %42 {offsets = [0, 0], sizes = [12, 8], strides = [1, 1]} : vector<12x32xbf16> to vector<12x8xbf16>
    %cst_25 = arith.constant dense<0.000000e+00> : vector<8x8xf32>
    %56 = tpu.matmul %54, %55, %cst_25 {dimension_numbers = #tpu.dot_dimension_numbers<[1], [0], [0], [1], [0, 0, 1, 1], [], []>} : vector<8x12xbf16>, vector<12x8xbf16>, vector<8x8xf32> -> vector<8x8xf32>
    %57 = tpu.reciprocal %53 {approx = true} : vector<8x1xf32> -> vector<8x1xf32>
    %58 = vector.broadcast %57 : vector<8x1xf32> to vector<8x8xf32>
    %59 = arith.mulf %56, %58 : vector<8x8xf32>
    %60 = vector.extract_strided_slice %40 {offsets = [0, 8], sizes = [8, 8], strides = [1, 1]} : vector<8x32xbf16> to vector<8x8xbf16>
    %61 = vector.extract_strided_slice %41 {offsets = [0, 8], sizes = [12, 8], strides = [1, 1]} : vector<12x32xbf16> to vector<12x8xbf16>
    %cst_26 = arith.constant dense<0.000000e+00> : vector<8x12xf32>
    %62 = tpu.matmul %60, %61, %cst_26 {dimension_numbers = #tpu.dot_dimension_numbers<[1], [1], [0], [0], [0, 0, 1, 0], [], []>} : vector<8x8xbf16>, vector<12x8xbf16>, vector<8x12xf32> -> vector<8x12xf32>
    %63 = arith.addf %62, %39 : vector<8x12xf32>
    %cst_27 = arith.constant dense<0xFF800000> : vector<8xf32>
    %64 = vector.multi_reduction <maximumf>, %63, %cst_27 [1] : vector<8x12xf32> to vector<8xf32>
    %65 = vector.shape_cast %64 : vector<8xf32> to vector<8x1xf32>
    %66 = vector.broadcast %65 : vector<8x1xf32> to vector<8x12xf32>
    %67 = arith.subf %63, %66 : vector<8x12xf32>
    %68 = math.exp %67 : vector<8x12xf32>
    %cst_28 = arith.constant dense<0.000000e+00> : vector<8xf32>
    %69 = vector.multi_reduction <add>, %68, %cst_28 [1] : vector<8x12xf32> to vector<8xf32>
    %70 = vector.shape_cast %69 : vector<8xf32> to vector<8x1xf32>
    %71 = arith.truncf %68 : vector<8x12xf32> to vector<8x12xbf16>
    %72 = vector.extract_strided_slice %42 {offsets = [0, 8], sizes = [12, 8], strides = [1, 1]} : vector<12x32xbf16> to vector<12x8xbf16>
    %cst_29 = arith.constant dense<0.000000e+00> : vector<8x8xf32>
    %73 = tpu.matmul %71, %72, %cst_29 {dimension_numbers = #tpu.dot_dimension_numbers<[1], [0], [0], [1], [0, 0, 1, 1], [], []>} : vector<8x12xbf16>, vector<12x8xbf16>, vector<8x8xf32> -> vector<8x8xf32>
    %74 = tpu.reciprocal %70 {approx = true} : vector<8x1xf32> -> vector<8x1xf32>
    %75 = vector.broadcast %74 : vector<8x1xf32> to vector<8x8xf32>
    %76 = arith.mulf %73, %75 : vector<8x8xf32>
    %77 = vector.extract_strided_slice %40 {offsets = [0, 16], sizes = [8, 8], strides = [1, 1]} : vector<8x32xbf16> to vector<8x8xbf16>
    %78 = vector.extract_strided_slice %41 {offsets = [0, 16], sizes = [12, 8], strides = [1, 1]} : vector<12x32xbf16> to vector<12x8xbf16>
    %cst_30 = arith.constant dense<0.000000e+00> : vector<8x12xf32>
    %79 = tpu.matmul %77, %78, %cst_30 {dimension_numbers = #tpu.dot_dimension_numbers<[1], [1], [0], [0], [0, 0, 1, 0], [], []>} : vector<8x8xbf16>, vector<12x8xbf16>, vector<8x12xf32> -> vector<8x12xf32>
    %80 = arith.addf %79, %39 : vector<8x12xf32>
    %cst_31 = arith.constant dense<0xFF800000> : vector<8xf32>
    %81 = vector.multi_reduction <maximumf>, %80, %cst_31 [1] : vector<8x12xf32> to vector<8xf32>
    %82 = vector.shape_cast %81 : vector<8xf32> to vector<8x1xf32>
    %83 = vector.broadcast %82 : vector<8x1xf32> to vector<8x12xf32>
    %84 = arith.subf %80, %83 : vector<8x12xf32>
    %85 = math.exp %84 : vector<8x12xf32>
    %cst_32 = arith.constant dense<0.000000e+00> : vector<8xf32>
    %86 = vector.multi_reduction <add>, %85, %cst_32 [1] : vector<8x12xf32> to vector<8xf32>
    %87 = vector.shape_cast %86 : vector<8xf32> to vector<8x1xf32>
    %88 = arith.truncf %85 : vector<8x12xf32> to vector<8x12xbf16>
    %89 = vector.extract_strided_slice %42 {offsets = [0, 16], sizes = [12, 8], strides = [1, 1]} : vector<12x32xbf16> to vector<12x8xbf16>
    %cst_33 = arith.constant dense<0.000000e+00> : vector<8x8xf32>
    %90 = tpu.matmul %88, %89, %cst_33 {dimension_numbers = #tpu.dot_dimension_numbers<[1], [0], [0], [1], [0, 0, 1, 1], [], []>} : vector<8x12xbf16>, vector<12x8xbf16>, vector<8x8xf32> -> vector<8x8xf32>
    %91 = tpu.reciprocal %87 {approx = true} : vector<8x1xf32> -> vector<8x1xf32>
    %92 = vector.broadcast %91 : vector<8x1xf32> to vector<8x8xf32>
    %93 = arith.mulf %90, %92 : vector<8x8xf32>
    %94 = vector.extract_strided_slice %40 {offsets = [0, 24], sizes = [8, 8], strides = [1, 1]} : vector<8x32xbf16> to vector<8x8xbf16>
    %95 = vector.extract_strided_slice %41 {offsets = [0, 24], sizes = [12, 8], strides = [1, 1]} : vector<12x32xbf16> to vector<12x8xbf16>
    %cst_34 = arith.constant dense<0.000000e+00> : vector<8x12xf32>
    %96 = tpu.matmul %94, %95, %cst_34 {dimension_numbers = #tpu.dot_dimension_numbers<[1], [1], [0], [0], [0, 0, 1, 0], [], []>} : vector<8x8xbf16>, vector<12x8xbf16>, vector<8x12xf32> -> vector<8x12xf32>
    %97 = arith.addf %96, %39 : vector<8x12xf32>
    %cst_35 = arith.constant dense<0xFF800000> : vector<8xf32>
    %98 = vector.multi_reduction <maximumf>, %97, %cst_35 [1] : vector<8x12xf32> to vector<8xf32>
    %99 = vector.shape_cast %98 : vector<8xf32> to vector<8x1xf32>
    %100 = vector.broadcast %99 : vector<8x1xf32> to vector<8x12xf32>
    %101 = arith.subf %97, %100 : vector<8x12xf32>
    %102 = math.exp %101 : vector<8x12xf32>
    %cst_36 = arith.constant dense<0.000000e+00> : vector<8xf32>
    %103 = vector.multi_reduction <add>, %102, %cst_36 [1] : vector<8x12xf32> to vector<8xf32>
    %104 = vector.shape_cast %103 : vector<8xf32> to vector<8x1xf32>
    %105 = arith.truncf %102 : vector<8x12xf32> to vector<8x12xbf16>
    %106 = vector.extract_strided_slice %42 {offsets = [0, 24], sizes = [12, 8], strides = [1, 1]} : vector<12x32xbf16> to vector<12x8xbf16>
    %cst_37 = arith.constant dense<0.000000e+00> : vector<8x8xf32>
    %107 = tpu.matmul %105, %106, %cst_37 {dimension_numbers = #tpu.dot_dimension_numbers<[1], [0], [0], [1], [0, 0, 1, 1], [], []>} : vector<8x12xbf16>, vector<12x8xbf16>, vector<8x8xf32> -> vector<8x8xf32>
    %108 = tpu.reciprocal %104 {approx = true} : vector<8x1xf32> -> vector<8x1xf32>
    %109 = vector.broadcast %108 : vector<8x1xf32> to vector<8x8xf32>
    %110 = arith.mulf %107, %109 : vector<8x8xf32>
    %111 = tpu.concatenate %59, %76, %93, %110 in 1 : vector<8x8xf32>, vector<8x8xf32>, vector<8x8xf32>, vector<8x8xf32> -> vector<8x32xf32>
    %112 = tpu.iota {dimensions = array<i32: 0>} : vector<8x12xi32>
    %c8_i32 = arith.constant 8 : i32
    %113 = vector.broadcast %c8_i32 : i32 to vector<8x12xi32>
    %114 = arith.addi %112, %113 : vector<8x12xi32>
    %115 = tpu.iota {dimensions = array<i32: 1>} : vector<8x12xi32>
    %c4_i32_38 = arith.constant 4 : i32
    %116 = vector.broadcast %c4_i32_38 : i32 to vector<8x12xi32>
    %117 = arith.addi %115, %116 : vector<8x12xi32>
    %118 = arith.subi %114, %117 : vector<8x12xi32>
    %119 = math.absi %118 : vector<8x12xi32>
    %c4_i32_39 = arith.constant 4 : i32
    %120 = vector.broadcast %c4_i32_39 : i32 to vector<8x12xi32>
    %121 = arith.cmpi sle, %119, %120 : vector<8x12xi32>
    %122 = vector.extract_strided_slice %3 {offsets = [0, 4], sizes = [1, 12], strides = [1, 1]} : vector<1x16xf32> to vector<1x12xf32>
    %cst_40 = arith.constant -1.000000e+09 : f32
    %123 = vector.shape_cast %122 : vector<1x12xf32> to vector<1x12xf32>
    %124 = vector.broadcast %123 : vector<1x12xf32> to vector<8x12xf32>
    %125 = vector.broadcast %cst_40 : f32 to vector<8x12xf32>
    %126 = arith.select %121, %124, %125 : vector<8x12xi1>, vector<8x12xf32>
    %127 = vector.extract_strided_slice %22 {offsets = [8, 0], sizes = [8, 32], strides = [1, 1]} : vector<16x32xbf16> to vector<8x32xbf16>
    %128 = vector.extract_strided_slice %23 {offsets = [4, 0], sizes = [12, 32], strides = [1, 1]} : vector<16x32xbf16> to vector<12x32xbf16>
    %129 = vector.extract_strided_slice %24 {offsets = [4, 0], sizes = [12, 32], strides = [1, 1]} : vector<16x32xbf16> to vector<12x32xbf16>
    %130 = vector.extract_strided_slice %127 {offsets = [0, 0], sizes = [8, 8], strides = [1, 1]} : vector<8x32xbf16> to vector<8x8xbf16>
    %131 = vector.extract_strided_slice %128 {offsets = [0, 0], sizes = [12, 8], strides = [1, 1]} : vector<12x32xbf16> to vector<12x8xbf16>
    %cst_41 = arith.constant dense<0.000000e+00> : vector<8x12xf32>
    %132 = tpu.matmul %130, %131, %cst_41 {dimension_numbers = #tpu.dot_dimension_numbers<[1], [1], [0], [0], [0, 0, 1, 0], [], []>} : vector<8x8xbf16>, vector<12x8xbf16>, vector<8x12xf32> -> vector<8x12xf32>
    %133 = arith.addf %132, %126 : vector<8x12xf32>
    %cst_42 = arith.constant dense<0xFF800000> : vector<8xf32>
    %134 = vector.multi_reduction <maximumf>, %133, %cst_42 [1] : vector<8x12xf32> to vector<8xf32>
    %135 = vector.shape_cast %134 : vector<8xf32> to vector<8x1xf32>
    %136 = vector.broadcast %135 : vector<8x1xf32> to vector<8x12xf32>
    %137 = arith.subf %133, %136 : vector<8x12xf32>
    %138 = math.exp %137 : vector<8x12xf32>
    %cst_43 = arith.constant dense<0.000000e+00> : vector<8xf32>
    %139 = vector.multi_reduction <add>, %138, %cst_43 [1] : vector<8x12xf32> to vector<8xf32>
    %140 = vector.shape_cast %139 : vector<8xf32> to vector<8x1xf32>
    %141 = arith.truncf %138 : vector<8x12xf32> to vector<8x12xbf16>
    %142 = vector.extract_strided_slice %129 {offsets = [0, 0], sizes = [12, 8], strides = [1, 1]} : vector<12x32xbf16> to vector<12x8xbf16>
    %cst_44 = arith.constant dense<0.000000e+00> : vector<8x8xf32>
    %143 = tpu.matmul %141, %142, %cst_44 {dimension_numbers = #tpu.dot_dimension_numbers<[1], [0], [0], [1], [0, 0, 1, 1], [], []>} : vector<8x12xbf16>, vector<12x8xbf16>, vector<8x8xf32> -> vector<8x8xf32>
    %144 = tpu.reciprocal %140 {approx = true} : vector<8x1xf32> -> vector<8x1xf32>
    %145 = vector.broadcast %144 : vector<8x1xf32> to vector<8x8xf32>
    %146 = arith.mulf %143, %145 : vector<8x8xf32>
    %147 = vector.extract_strided_slice %127 {offsets = [0, 8], sizes = [8, 8], strides = [1, 1]} : vector<8x32xbf16> to vector<8x8xbf16>
    %148 = vector.extract_strided_slice %128 {offsets = [0, 8], sizes = [12, 8], strides = [1, 1]} : vector<12x32xbf16> to vector<12x8xbf16>
    %cst_45 = arith.constant dense<0.000000e+00> : vector<8x12xf32>
    %149 = tpu.matmul %147, %148, %cst_45 {dimension_numbers = #tpu.dot_dimension_numbers<[1], [1], [0], [0], [0, 0, 1, 0], [], []>} : vector<8x8xbf16>, vector<12x8xbf16>, vector<8x12xf32> -> vector<8x12xf32>
    %150 = arith.addf %149, %126 : vector<8x12xf32>
    %cst_46 = arith.constant dense<0xFF800000> : vector<8xf32>
    %151 = vector.multi_reduction <maximumf>, %150, %cst_46 [1] : vector<8x12xf32> to vector<8xf32>
    %152 = vector.shape_cast %151 : vector<8xf32> to vector<8x1xf32>
    %153 = vector.broadcast %152 : vector<8x1xf32> to vector<8x12xf32>
    %154 = arith.subf %150, %153 : vector<8x12xf32>
    %155 = math.exp %154 : vector<8x12xf32>
    %cst_47 = arith.constant dense<0.000000e+00> : vector<8xf32>
    %156 = vector.multi_reduction <add>, %155, %cst_47 [1] : vector<8x12xf32> to vector<8xf32>
    %157 = vector.shape_cast %156 : vector<8xf32> to vector<8x1xf32>
    %158 = arith.truncf %155 : vector<8x12xf32> to vector<8x12xbf16>
    %159 = vector.extract_strided_slice %129 {offsets = [0, 8], sizes = [12, 8], strides = [1, 1]} : vector<12x32xbf16> to vector<12x8xbf16>
    %cst_48 = arith.constant dense<0.000000e+00> : vector<8x8xf32>
    %160 = tpu.matmul %158, %159, %cst_48 {dimension_numbers = #tpu.dot_dimension_numbers<[1], [0], [0], [1], [0, 0, 1, 1], [], []>} : vector<8x12xbf16>, vector<12x8xbf16>, vector<8x8xf32> -> vector<8x8xf32>
    %161 = tpu.reciprocal %157 {approx = true} : vector<8x1xf32> -> vector<8x1xf32>
    %162 = vector.broadcast %161 : vector<8x1xf32> to vector<8x8xf32>
    %163 = arith.mulf %160, %162 : vector<8x8xf32>
    %164 = vector.extract_strided_slice %127 {offsets = [0, 16], sizes = [8, 8], strides = [1, 1]} : vector<8x32xbf16> to vector<8x8xbf16>
    %165 = vector.extract_strided_slice %128 {offsets = [0, 16], sizes = [12, 8], strides = [1, 1]} : vector<12x32xbf16> to vector<12x8xbf16>
    %cst_49 = arith.constant dense<0.000000e+00> : vector<8x12xf32>
    %166 = tpu.matmul %164, %165, %cst_49 {dimension_numbers = #tpu.dot_dimension_numbers<[1], [1], [0], [0], [0, 0, 1, 0], [], []>} : vector<8x8xbf16>, vector<12x8xbf16>, vector<8x12xf32> -> vector<8x12xf32>
    %167 = arith.addf %166, %126 : vector<8x12xf32>
    %cst_50 = arith.constant dense<0xFF800000> : vector<8xf32>
    %168 = vector.multi_reduction <maximumf>, %167, %cst_50 [1] : vector<8x12xf32> to vector<8xf32>
    %169 = vector.shape_cast %168 : vector<8xf32> to vector<8x1xf32>
    %170 = vector.broadcast %169 : vector<8x1xf32> to vector<8x12xf32>
    %171 = arith.subf %167, %170 : vector<8x12xf32>
    %172 = math.exp %171 : vector<8x12xf32>
    %cst_51 = arith.constant dense<0.000000e+00> : vector<8xf32>
    %173 = vector.multi_reduction <add>, %172, %cst_51 [1] : vector<8x12xf32> to vector<8xf32>
    %174 = vector.shape_cast %173 : vector<8xf32> to vector<8x1xf32>
    %175 = arith.truncf %172 : vector<8x12xf32> to vector<8x12xbf16>
    %176 = vector.extract_strided_slice %129 {offsets = [0, 16], sizes = [12, 8], strides = [1, 1]} : vector<12x32xbf16> to vector<12x8xbf16>
    %cst_52 = arith.constant dense<0.000000e+00> : vector<8x8xf32>
    %177 = tpu.matmul %175, %176, %cst_52 {dimension_numbers = #tpu.dot_dimension_numbers<[1], [0], [0], [1], [0, 0, 1, 1], [], []>} : vector<8x12xbf16>, vector<12x8xbf16>, vector<8x8xf32> -> vector<8x8xf32>
    %178 = tpu.reciprocal %174 {approx = true} : vector<8x1xf32> -> vector<8x1xf32>
    %179 = vector.broadcast %178 : vector<8x1xf32> to vector<8x8xf32>
    %180 = arith.mulf %177, %179 : vector<8x8xf32>
    %181 = vector.extract_strided_slice %127 {offsets = [0, 24], sizes = [8, 8], strides = [1, 1]} : vector<8x32xbf16> to vector<8x8xbf16>
    %182 = vector.extract_strided_slice %128 {offsets = [0, 24], sizes = [12, 8], strides = [1, 1]} : vector<12x32xbf16> to vector<12x8xbf16>
    %cst_53 = arith.constant dense<0.000000e+00> : vector<8x12xf32>
    %183 = tpu.matmul %181, %182, %cst_53 {dimension_numbers = #tpu.dot_dimension_numbers<[1], [1], [0], [0], [0, 0, 1, 0], [], []>} : vector<8x8xbf16>, vector<12x8xbf16>, vector<8x12xf32> -> vector<8x12xf32>
    %184 = arith.addf %183, %126 : vector<8x12xf32>
    %cst_54 = arith.constant dense<0xFF800000> : vector<8xf32>
    %185 = vector.multi_reduction <maximumf>, %184, %cst_54 [1] : vector<8x12xf32> to vector<8xf32>
    %186 = vector.shape_cast %185 : vector<8xf32> to vector<8x1xf32>
    %187 = vector.broadcast %186 : vector<8x1xf32> to vector<8x12xf32>
    %188 = arith.subf %184, %187 : vector<8x12xf32>
    %189 = math.exp %188 : vector<8x12xf32>
    %cst_55 = arith.constant dense<0.000000e+00> : vector<8xf32>
    %190 = vector.multi_reduction <add>, %189, %cst_55 [1] : vector<8x12xf32> to vector<8xf32>
    %191 = vector.shape_cast %190 : vector<8xf32> to vector<8x1xf32>
    %192 = arith.truncf %189 : vector<8x12xf32> to vector<8x12xbf16>
    %193 = vector.extract_strided_slice %129 {offsets = [0, 24], sizes = [12, 8], strides = [1, 1]} : vector<12x32xbf16> to vector<12x8xbf16>
    %cst_56 = arith.constant dense<0.000000e+00> : vector<8x8xf32>
    %194 = tpu.matmul %192, %193, %cst_56 {dimension_numbers = #tpu.dot_dimension_numbers<[1], [0], [0], [1], [0, 0, 1, 1], [], []>} : vector<8x12xbf16>, vector<12x8xbf16>, vector<8x8xf32> -> vector<8x8xf32>
    %195 = tpu.reciprocal %191 {approx = true} : vector<8x1xf32> -> vector<8x1xf32>
    %196 = vector.broadcast %195 : vector<8x1xf32> to vector<8x8xf32>
    %197 = arith.mulf %194, %196 : vector<8x8xf32>
    %198 = tpu.concatenate %146, %163, %180, %197 in 1 : vector<8x8xf32>, vector<8x8xf32>, vector<8x8xf32>, vector<8x8xf32> -> vector<8x32xf32>
    %199 = tpu.concatenate %111, %198 in 0 : vector<8x32xf32>, vector<8x32xf32> -> vector<16x32xf32>
    %200 = arith.addf %1, %199 : vector<16x32xf32>
    %c0_57 = arith.constant 0 : index
    %c0_58 = arith.constant 0 : index
    %201 = vector.load %arg9[%c0_57, %c0_58] : memref<1x32xf32, #tpu.memory_space<vmem>>, vector<1x32xf32>
    %c0_59 = arith.constant 0 : index
    %c0_60 = arith.constant 0 : index
    %202 = vector.load %arg10[%c0_59, %c0_60] : memref<1x32xf32, #tpu.memory_space<vmem>>, vector<1x32xf32>
    %cst_61 = arith.constant dense<0.000000e+00> : vector<16xf32>
    %203 = vector.multi_reduction <add>, %200, %cst_61 [1] : vector<16x32xf32> to vector<16xf32>
    %204 = vector.shape_cast %203 : vector<16xf32> to vector<16x1xf32>
    %cst_62 = arith.constant 3.200000e+01 : f32
    %205 = vector.broadcast %cst_62 : f32 to vector<16x1xf32>
    %206 = arith.divf %204, %205 : vector<16x1xf32>
    %207 = vector.broadcast %206 : vector<16x1xf32> to vector<16x32xf32>
    %208 = arith.subf %200, %207 : vector<16x32xf32>
    %209 = arith.mulf %208, %208 : vector<16x32xf32>
    %cst_63 = arith.constant dense<0.000000e+00> : vector<16xf32>
    %210 = vector.multi_reduction <add>, %209, %cst_63 [1] : vector<16x32xf32> to vector<16xf32>
    %211 = vector.shape_cast %210 : vector<16xf32> to vector<16x1xf32>
    %cst_64 = arith.constant 3.200000e+01 : f32
    %212 = vector.broadcast %cst_64 : f32 to vector<16x1xf32>
    %213 = arith.divf %211, %212 : vector<16x1xf32>
    %cst_65 = arith.constant 9.99999974E-6 : f32
    %214 = vector.broadcast %cst_65 : f32 to vector<16x1xf32>
    %215 = arith.addf %213, %214 : vector<16x1xf32>
    %216 = math.rsqrt %215 : vector<16x1xf32>
    %217 = vector.broadcast %216 : vector<16x1xf32> to vector<16x32xf32>
    %218 = arith.mulf %208, %217 : vector<16x32xf32>
    %219 = vector.broadcast %201 : vector<1x32xf32> to vector<16x32xf32>
    %220 = arith.mulf %218, %219 : vector<16x32xf32>
    %221 = vector.broadcast %202 : vector<1x32xf32> to vector<16x32xf32>
    %222 = arith.addf %220, %221 : vector<16x32xf32>
    %223 = arith.truncf %222 : vector<16x32xf32> to vector<16x32xbf16>
    %c0_66 = arith.constant 0 : index
    %c0_67 = arith.constant 0 : index
    %224 = vector.load %arg11[%c0_66, %c0_67] : memref<32x64xbf16, #tpu.memory_space<vmem>>, vector<32x64xbf16>
    %cst_68 = arith.constant dense<0.000000e+00> : vector<16x64xf32>
    %225 = tpu.matmul %223, %224, %cst_68 {dimension_numbers = #tpu.dot_dimension_numbers<[1], [0], [0], [1], [0, 0, 1, 1], [], []>} : vector<16x32xbf16>, vector<32x64xbf16>, vector<16x64xf32> -> vector<16x64xf32>
    %c0_69 = arith.constant 0 : index
    %c0_70 = arith.constant 0 : index
    %226 = vector.load %arg12[%c0_69, %c0_70] : memref<1x64xf32, #tpu.memory_space<vmem>>, vector<1x64xf32>
    %227 = vector.broadcast %226 : vector<1x64xf32> to vector<16x64xf32>
    %228 = arith.addf %225, %227 : vector<16x64xf32>
    %cst_71 = arith.constant 0.000000e+00 : f32
    %229 = vector.broadcast %cst_71 : f32 to vector<16x64xf32>
    %230 = arith.maximumf %228, %229 : vector<16x64xf32>
    %231 = arith.truncf %230 : vector<16x64xf32> to vector<16x64xbf16>
    %c0_72 = arith.constant 0 : index
    %c0_73 = arith.constant 0 : index
    %232 = vector.load %arg13[%c0_72, %c0_73] : memref<64x32xbf16, #tpu.memory_space<vmem>>, vector<64x32xbf16>
    %cst_74 = arith.constant dense<0.000000e+00> : vector<16x32xf32>
    %233 = tpu.matmul %231, %232, %cst_74 {dimension_numbers = #tpu.dot_dimension_numbers<[1], [0], [0], [1], [0, 0, 1, 1], [], []>} : vector<16x64xbf16>, vector<64x32xbf16>, vector<16x32xf32> -> vector<16x32xf32>
    %c0_75 = arith.constant 0 : index
    %c0_76 = arith.constant 0 : index
    %234 = vector.load %arg14[%c0_75, %c0_76] : memref<1x32xf32, #tpu.memory_space<vmem>>, vector<1x32xf32>
    %235 = vector.broadcast %234 : vector<1x32xf32> to vector<16x32xf32>
    %236 = arith.addf %233, %235 : vector<16x32xf32>
    %237 = arith.addf %222, %236 : vector<16x32xf32>
    %c0_77 = arith.constant 0 : index
    %c0_78 = arith.constant 0 : index
    %238 = vector.load %arg15[%c0_77, %c0_78] : memref<1x32xf32, #tpu.memory_space<vmem>>, vector<1x32xf32>
    %c0_79 = arith.constant 0 : index
    %c0_80 = arith.constant 0 : index
    %239 = vector.load %arg16[%c0_79, %c0_80] : memref<1x32xf32, #tpu.memory_space<vmem>>, vector<1x32xf32>
    %cst_81 = arith.constant dense<0.000000e+00> : vector<16xf32>
    %240 = vector.multi_reduction <add>, %237, %cst_81 [1] : vector<16x32xf32> to vector<16xf32>
    %241 = vector.shape_cast %240 : vector<16xf32> to vector<16x1xf32>
    %cst_82 = arith.constant 3.200000e+01 : f32
    %242 = vector.broadcast %cst_82 : f32 to vector<16x1xf32>
    %243 = arith.divf %241, %242 : vector<16x1xf32>
    %244 = vector.broadcast %243 : vector<16x1xf32> to vector<16x32xf32>
    %245 = arith.subf %237, %244 : vector<16x32xf32>
    %246 = arith.mulf %245, %245 : vector<16x32xf32>
    %cst_83 = arith.constant dense<0.000000e+00> : vector<16xf32>
    %247 = vector.multi_reduction <add>, %246, %cst_83 [1] : vector<16x32xf32> to vector<16xf32>
    %248 = vector.shape_cast %247 : vector<16xf32> to vector<16x1xf32>
    %cst_84 = arith.constant 3.200000e+01 : f32
    %249 = vector.broadcast %cst_84 : f32 to vector<16x1xf32>
    %250 = arith.divf %248, %249 : vector<16x1xf32>
    %cst_85 = arith.constant 9.99999974E-6 : f32
    %251 = vector.broadcast %cst_85 : f32 to vector<16x1xf32>
    %252 = arith.addf %250, %251 : vector<16x1xf32>
    %253 = math.rsqrt %252 : vector<16x1xf32>
    %254 = vector.broadcast %253 : vector<16x1xf32> to vector<16x32xf32>
    %255 = arith.mulf %245, %254 : vector<16x32xf32>
    %256 = vector.broadcast %238 : vector<1x32xf32> to vector<16x32xf32>
    %257 = arith.mulf %255, %256 : vector<16x32xf32>
    %258 = vector.broadcast %239 : vector<1x32xf32> to vector<16x32xf32>
    %259 = arith.addf %257, %258 : vector<16x32xf32>
    %c0_86 = arith.constant 0 : index
    %c0_87 = arith.constant 0 : index
    %c0_88 = arith.constant 0 : index
    %260 = vector.load %arg17[%c0_86, %c0_87, %c0_88] : memref<1x16x32xf32, #tpu.memory_space<vmem>>, vector<1x16x32xf32>
    %261 = vector.shape_cast %260 : vector<1x16x32xf32> to vector<16x32xf32>
    %262 = vector.shape_cast %259 : vector<16x32xf32> to vector<1x16x32xf32>
    tpu.vector_store %arg17[%c0_86, %c0_87, %c0_88], %262 {strides = array<i32>} : memref<1x16x32xf32, #tpu.memory_space<vmem>>, vector<1x16x32xf32>,
    return
  }
  func.func @transform_0(%arg0: i32) -> (i32, i32, i32) {
    %c0_i32 = arith.constant 0 : i32
    %c0_i32_0 = arith.constant 0 : i32
    %c0_i32_1 = arith.constant 0 : i32
    return %arg0, %c0_i32, %c0_i32_0 : i32, i32, i32
  }
  func.func @transform_1(%arg0: i32) -> (i32, i32, i32) {
    %c0_i32 = arith.constant 0 : i32
    %c0_i32_0 = arith.constant 0 : i32
    %c0_i32_1 = arith.constant 0 : i32
    return %arg0, %c0_i32, %c0_i32_0 : i32, i32, i32
  }
  func.func @transform_2(%arg0: i32) -> (i32, i32) {
    %c0_i32 = arith.constant 0 : i32
    %c0_i32_0 = arith.constant 0 : i32
    %c0_i32_1 = arith.constant 0 : i32
    return %c0_i32, %c0_i32_0 : i32, i32
  }
  func.func @transform_3(%arg0: i32) -> (i32, i32) {
    %c0_i32 = arith.constant 0 : i32
    %c0_i32_0 = arith.constant 0 : i32
    %c0_i32_1 = arith.constant 0 : i32
    return %c0_i32, %c0_i32_0 : i32, i32
  }
  func.func @transform_4(%arg0: i32) -> (i32, i32) {
    %c0_i32 = arith.constant 0 : i32
    %c0_i32_0 = arith.constant 0 : i32
    %c0_i32_1 = arith.constant 0 : i32
    return %c0_i32, %c0_i32_0 : i32, i32
  }
  func.func @transform_5(%arg0: i32) -> (i32, i32) {
    %c0_i32 = arith.constant 0 : i32
    %c0_i32_0 = arith.constant 0 : i32
    %c0_i32_1 = arith.constant 0 : i32
    return %c0_i32, %c0_i32_0 : i32, i32
  }
  func.func @transform_6(%arg0: i32) -> (i32, i32) {
    %c0_i32 = arith.constant 0 : i32
    %c0_i32_0 = arith.constant 0 : i32
    %c0_i32_1 = arith.constant 0 : i32
    return %c0_i32, %c0_i32_0 : i32, i32
  }
  func.func @transform_7(%arg0: i32) -> (i32, i32) {
    %c0_i32 = arith.constant 0 : i32
    %c0_i32_0 = arith.constant 0 : i32
    %c0_i32_1 = arith.constant 0 : i32
    return %c0_i32, %c0_i32_0 : i32, i32
  }
  func.func @transform_8(%arg0: i32) -> (i32, i32) {
    %c0_i32 = arith.constant 0 : i32
    %c0_i32_0 = arith.constant 0 : i32
    %c0_i32_1 = arith.constant 0 : i32
    return %c0_i32, %c0_i32_0 : i32, i32
  }
  func.func @transform_9(%arg0: i32) -> (i32, i32) {
    %c0_i32 = arith.constant 0 : i32
    %c0_i32_0 = arith.constant 0 : i32
    %c0_i32_1 = arith.constant 0 : i32
    return %c0_i32, %c0_i32_0 : i32, i32
  }
  func.func @transform_10(%arg0: i32) -> (i32, i32) {
    %c0_i32 = arith.constant 0 : i32
    %c0_i32_0 = arith.constant 0 : i32
    %c0_i32_1 = arith.constant 0 : i32
    return %c0_i32, %c0_i32_0 : i32, i32
  }
  func.func @transform_11(%arg0: i32) -> (i32, i32) {
    %c0_i32 = arith.constant 0 : i32
    %c0_i32_0 = arith.constant 0 : i32
    %c0_i32_1 = arith.constant 0 : i32
    return %c0_i32, %c0_i32_0 : i32, i32
  }
  func.func @transform_12(%arg0: i32) -> (i32, i32) {
    %c0_i32 = arith.constant 0 : i32
    %c0_i32_0 = arith.constant 0 : i32
    %c0_i32_1 = arith.constant 0 : i32
    return %c0_i32, %c0_i32_0 : i32, i32
  }
  func.func @transform_13(%arg0: i32) -> (i32, i32) {
    %c0_i32 = arith.constant 0 : i32
    %c0_i32_0 = arith.constant 0 : i32
    %c0_i32_1 = arith.constant 0 : i32
    return %c0_i32, %c0_i32_0 : i32, i32
  }
  func.func @transform_14(%arg0: i32) -> (i32, i32) {
    %c0_i32 = arith.constant 0 : i32
    %c0_i32_0 = arith.constant 0 : i32
    %c0_i32_1 = arith.constant 0 : i32
    return %c0_i32, %c0_i32_0 : i32, i32
  }
  func.func @transform_15(%arg0: i32) -> (i32, i32) {
    %c0_i32 = arith.constant 0 : i32
    %c0_i32_0 = arith.constant 0 : i32
    %c0_i32_1 = arith.constant 0 : i32
    return %c0_i32, %c0_i32_0 : i32, i32
  }
  func.func @transform_16(%arg0: i32) -> (i32, i32, i32) {
    %c0_i32 = arith.constant 0 : i32
    %c0_i32_0 = arith.constant 0 : i32
    %c0_i32_1 = arith.constant 0 : i32
    return %arg0, %c0_i32, %c0_i32_0 : i32, i32, i32
  }
}

</mosaic_0001>

<bundles_post_ra>
// kernel: tpu_custom_call.1
= control target key start
LH: loop header
LB: loop body
LE: loop exit
PB: predicated region body
PF: predicated region fallthrough
CT: control target
= control target key end

     0   :  { %s3334_s0 = inlined_call_operand.vmem [shape: f32[2,16,32], index: 0, kind: input, shape index: {}]   ;;  %s3335_s1 = inlined_call_operand.hbm [shape: f32[2,1,16], index: 1, kind: input, shape index: {}]   ;;  %s3336_s2 = inlined_call_operand.vmem [shape: bf16[32,32], index: 2, kind: input, shape index: {}]   ;;  %s3337_s3 = inlined_call_operand.vmem [shape: f32[1,32], index: 3, kind: input, shape index: {}]   ;;  %s3338_s4 = inlined_call_operand.hbm [shape: bf16[32,32], index: 4, kind: input, shape index: {}]   ;;  %s3339_s5 = inlined_call_operand.vmem [shape: f32[1,32], index: 5, kind: input, shape index: {}]   ;;  %s3340_s6 = inlined_call_operand.hbm [shape: bf16[32,32], index: 6, kind: input, shape index: {}]   ;;  %s3341_s7 = inlined_call_operand.vmem [shape: f32[1,32], index: 7, kind: input, shape index: {}]   ;;  %s3342_s8 = inlined_call_operand.vmem [shape: f32[1,32], index: 8, kind: input, shape index: {}]   ;;  %s3343_s9 = inlined_call_operand.vmem [shape: f32[1,32], index: 9, kind: input, shape index: {}]   ;;  %s3344_s10 = inlined_call_operand.hbm [shape: bf16[32,64], index: 10, kind: input, shape index: {}]   ;;  %s3345_s11 = inlined_call_operand.hbm [shape: f32[1,64], index: 11, kind: input, shape index: {}]   ;;  %s3346_s12 = inlined_call_operand.vmem [shape: bf16[64,32], index: 12, kind: input, shape index: {}]   ;;  %s3347_s13 = inlined_call_operand.vmem [shape: f32[1,32], index: 13, kind: input, shape index: {}]   ;;  %s3348_s14 = inlined_call_operand.vmem [shape: f32[1,32], index: 14, kind: input, shape index: {}]   ;;  %s3349_s15 = inlined_call_operand.vmem [shape: f32[1,32], index: 15, kind: input, shape index: {}]   ;;  %s3350_s16 = inlined_call_operand.hbm [shape: f32[2,16,32], index: 16, kind: output, shape index: {}]  }
   0x1   :  { %3360 = sst [smem:[#allocation20_spill]] %s3334_s0 }
   0x2   :  { %3361 = sst [smem:[#allocation21_spill]] %s3338_s4 }
   0x3   :  { %3362 = sst [smem:[#allocation22_spill]] %s3340_s6 }
   0x4   :  { %3363 = sst [smem:[#allocation23_spill]] %s3344_s10 }
   0x5   :  { %3364 = sst [smem:[#allocation24_spill]] %s3345_s11 }
   0x6   :  { %3365 = sst [smem:[#allocation25_spill]] %s3349_s15 }
   0x7   :  { %3366 = sst [smem:[#allocation26_spill]] %s3350_s16 }
   0x8   :  { %21 = vsyncpa [#allocation3], 0 }
   0x9   :  { %23 = vsyncpa [#allocation3 + $0x1], 0 }
   0xa   :  { %24 = vsyncpa [#allocation6], 0 }
   0xb   :  { %25 = vsyncpa [#allocation9], 0 }
   0xc   :  { %26 = vsyncpa [#allocation4], 0 }
   0xd   :  { %28 = vsyncpa [#allocation4 + $0x1], 0  ;;  %s2853_s21 = smov 0   ;;  %s2855_s22 = smov 0  }
   0xe   :  { %s2857_s23 = smov 0   ;;  %s2859_s24 = smov 0  }
   0xf LB: > { %3367 = sst [smem:[#allocation16_spill]] %s2744_s23  ;;  %s2750_s25 = smov [#allocation5]   ;;  %s2748_s24 = sphi %s2859_s24, %s3395_s24   ;;  %s2744_s23 = sphi %s2857_s23, %s3397_s23   ;;  %s2740_s22 = sphi %s2855_s22, %s3399_s22   ;;  %s2736_s21 = sphi %s2853_s21, %s3398_s21  }
  0x10   : > { %3368 = sst [smem:[#allocation17_spill]] %s2748_s24  ;;  %s429_s26 = sshll.u32 %s2750_s25, 4  ;;  %s430_s26 = int_to_ptr.vmem [resolvable:$true] %s429_s26 }
  0x11   : > { %s2874_s27 = sadd.s32 4294967295, %s2748_s24   ;;  %p2137_p0 = scmp.ge.s32.totalorder %s2748_s24, 1 }
  0x12   : > { %p3353_p1 = scmp.eq.s32.totalorder %s2874_s27, 0  ;;  %p411_p2 = scmp.lt.s32.totalorder %s2748_s24, 3 }
  0x13   : > { %s2751_s29 = smov [#allocation8]   ;;  %s2752_s17 = smov [#allocation7]  }
  0x14   : > { %p2879_p3 = pnand %p2137_p0, %p411_p2  ;;  %s467_s30 = sshll.u32 %s2751_s29, 4  ;;  %s2892_s30 = int_to_ptr.vmem [resolvable:$true] %s467_s30 }
  0x15   : > { %s445_s18 = sshll.u32 %s2752_s17, 4  ;;  %s2555_s19 = scalar_lea.vmem %s430_s26, 256  ;;  %s2894_s18 = int_to_ptr.vmem [resolvable:$true] %s445_s18 }
  0x16   : > { %s3369_s28 = scalar_select %p2879_p3, 1, 0 }
  0x17   : > { %p2413_p5 = pneg %p2879_p3  ;;  %p2556_p8 = scmp.ne.s32.totalorder %s430_s26, %s2555_s19 }
  0x18   : > { %p2563_p11 = scmp.lt.s32.totalorder %s430_s26, %s430_s26  ;;  %p2564_p12 = scmp.lt.s32.totalorder %s2555_s19, %s2555_s19 }
  0x19   : > { %p2888_p6 = pnand %p2413_p5, %p3353_p1 }
  0x1a   : > { %p2565_p13 = por %p2564_p12, %p2563_p11 }
  0x1b   : > { %p2546_p7 = pneg %p2888_p6 }
  0x1d   : > { %p2558_p9 = pnand %p2556_p8, %p2546_p7 }
  0x1f   : > { %p2559_p10 = pneg %p2558_p9 }
  0x21   : > { %p2566_p0 = pnand %p2565_p13, %p2559_p10 }
  0x23   : > { %2569 = shalt.err (!%p2566_p0)
}
  0x24   : > { %s2753_s20 = smov 64   ;;  %s2754_s25 = smov 4  }
  0x25   : > { %s3371_s4 = sld [smem:[#allocation21_spill]]  ;;  %s2581_s16 = scalar_lea.vmem %s2892_s30, 256 }
  0x26   : > { %p2582_p2 = scmp.ne.s32.totalorder %s2892_s30, %s2581_s16  ;;  %p2589_p9 = scmp.lt.s32.totalorder %s2892_s30, %s2892_s30 }
  0x27   : > { %p2590_p10 = scmp.lt.s32.totalorder %s2581_s16, %s2581_s16 }
  0x28   : > { %p2584_p5 = pnand %p2582_p2, %p2546_p7 }
  0x29   : > { %p2591_p11 = por %p2590_p10, %p2589_p9 }
  0x2a   : > { %p2585_p8 = pneg %p2584_p5 }
  0x2b   : > { %2416 = dma.hbm_to_vmem [thread:$0]  (!%p2888_p6), %s3371_s4, 256, %s430_s26, [#allocation6], %s2753_s20, %s2753_s20, %s2754_s25  }
  0x2c   : > { %p2592_p12 = pnand %p2591_p11, %p2585_p8 }
  0x2e   : > { %2595 = shalt.err (!%p2592_p12)
}
  0x2f   : > { %s3372_s10 = sld [smem:[#allocation23_spill]]  ;;  %s2607_s26 = scalar_lea.vmem %s2894_s18, 256 }
  0x30   : > { %p2608_p13 = scmp.ne.s32.totalorder %s2894_s18, %s2607_s26  ;;  %p2615_p5 = scmp.lt.s32.totalorder %s2894_s18, %s2894_s18 }
  0x31   : > { %p2616_p8 = scmp.lt.s32.totalorder %s2607_s26, %s2607_s26 }
  0x32   : > { %p2610_p0 = pnand %p2608_p13, %p2546_p7 }
  0x33   : > { %p2617_p9 = por %p2616_p8, %p2615_p5 }
  0x34   : > { %p2611_p2 = pneg %p2610_p0 }
  0x35   : > { %2422 = dma.hbm_to_vmem [thread:$0]  (!%p2888_p6), %s3372_s10, 256, %s2892_s30, [#allocation9], %s2753_s20, %s2753_s20, %s2754_s25  }
  0x36   : > { %p2618_p10 = pnand %p2617_p9, %p2611_p2 }
  0x38   : > { %2621 = shalt.err (!%p2618_p10)
}
  0x39   : > { %s3373_s6 = sld [smem:[#allocation22_spill]]  ;;  %s2755_s30 = smov [#allocation10]  }
  0x3a   : > { %s481_s29 = sshll.u32 %s2755_s30, 4  ;;  %s482_s29 = int_to_ptr.vmem [resolvable:$true] %s481_s29 }
  0x3b   : > { %s2633_s17 = scalar_lea.vmem %s482_s29, 16  ;;  %s2640_s19 = scalar_lea.vmem %s482_s29, 32 }
  0x3c   : > { %p2634_p11 = scmp.ne.s32.totalorder %s482_s29, %s2633_s17  ;;  %p2641_p0 = scmp.lt.s32.totalorder %s482_s29, %s482_s29 }
  0x3d   : > { %p2642_p2 = scmp.lt.s32.totalorder %s2640_s19, %s2633_s17 }
  0x3e   : > { %p2636_p12 = pnand %p2634_p11, %p2546_p7 }
  0x3f   : > { %2419 = dma.hbm_to_vmem [thread:$0]  (!%p2888_p6), %s3373_s6, 256, %s2894_s18, [#allocation6], %s2753_s20, %s2753_s20, %s2754_s25  }
  0x40   : > { %p2637_p13 = pneg %p2636_p12  ;;  %p2643_p5 = por %p2642_p2, %p2641_p0 }
  0x42   : > { %p2644_p8 = pnand %p2643_p5, %p2637_p13 }
  0x44   : > { %2647 = shalt.err (!%p2644_p8)
}
  0x45   : > { %s3374_s11 = sld [smem:[#allocation24_spill]]  ;;  %s2136_s18 = sadd.s32 4294967294, %s2748_s24  }
  0x46   : > { %s2942_s0 = sadd.s32 1, %s2748_s24   ;;  %s67_s25 = sadd.s32 1, %s2744_s23 }
  0x47   : > { %3375 = sst [smem:[#allocation18_spill]] %s2942_s0  ;;  %s64_s20 = ssub.s32 %s2748_s24, %s2942_s0 }
  0x48   : > { %p65_p7 = scmp.eq.s32.totalorder %s64_s20, 0  ;;  %p74_p9 = scmp.ne.s32.totalorder %s2744_s23, %s2740_s22 }
  0x49   : > { %p75_p10 = scmp.eq.s32.totalorder %s2748_s24, 0  ;;  %p80_p11 = scmp.ne.s32.totalorder %s2740_s22, %s2736_s21 }
  0x4a   : > { %s2953_s16 = scalar_select %p65_p7, %s2744_s23, %s67_s25  }
  0x4b   : > { %2425 = dma.hbm_to_vmem [thread:$0]  (!%p2888_p6), %s3374_s11, 16, %s482_s29, [#allocation9]  }
  0x4c   : > { %3376 = sst [smem:[#allocation19_spill]] %s2953_s16  ;;  %p2955_p12 = por %p75_p10, %p74_p9 }
  0x4d   : > { %p2961_p6 = por %p3353_p1, %p80_p11  ;;  %p398_p13 = scmp.eq.s32.totalorder %s2874_s27, 1 }
  0x4e   : > { %p404_p0 = scmp.eq.s32.totalorder %s2136_s18, 1  ;;  %p2438_p2 = scmp.lt.s32.totalorder %s2748_s24, 2 }
  0x4f   : > { %s3378_s29 = scalar_select %p2961_p6, 1, 0 }
  0x50   : > { %s512_s17 = sand.u32 1, %s2744_s23   ;;  %p2968_p5 = por %p398_p13, %p74_p9 }
  0x51   : > { %p2972_p8 = por %p404_p0, %p80_p11  ;;  %s2143_s15 = sshll.u32 %s2748_s24, 4 }
  0x52   : > { %s3379_s19 = scalar_select %p2968_p5, 1, 0 }
  0x53   : > { %s3380_s26 = scalar_select %p2972_p8, 1, 0 }
  0x54   : > { %s515_s20 = scalar_lea.vmem [#allocation2], %s512_s17  ;;  %s2980_s10 = scalar_lea.hbm %s3335_s1, %s2143_s15 }
  0x55   : > { %s522_s25 = sshll.u32 %s515_s20, 4  ;;  %p2984_p7 = pnand %p2438_p2, %p2955_p12  ;;  %s523_s25 = int_to_ptr.vmem [resolvable:$true] %s522_s25 }
  0x56   : > { %s513_s11 = scalar_lea.sflag [#allocation3], %s512_s17  ;;  %s2648_s16 = scalar_lea.hbm %s2980_s10, 16 }
  0x57   : > { %p2649_p9 = scmp.ne.s32.totalorder %s2980_s10, %s2648_s16  ;;  %p2650_p10 = pneg %p2984_p7 }
  0x58   : > { %s2653_s15 = scalar_lea.hbm %s3335_s1, 32  ;;  %p2654_p0 = scmp.lt.s32.totalorder %s2980_s10, %s3335_s1 }
  0x59   : > { %p2651_p11 = pnand %p2650_p10, %p2649_p9  ;;  %p2655_p12 = scmp.lt.s32.totalorder %s2653_s15, %s2648_s16 }
  0x5b   : > { %p2652_p13 = pneg %p2651_p11  ;;  %p2656_p2 = por %p2655_p12, %p2654_p0 }
  0x5d   : > { %p2657_p4 = pnand %p2656_p2, %p2652_p13 }
  0x5f   : > { %2660 = shalt.err (!%p2657_p4)
}
  0x60   : > { %s2661_s30 = scalar_lea.vmem %s523_s25, 16  ;;  %s2756_s17 = smov [#allocation2]  }
  0x61   : > { %p2662_p1 = scmp.ne.s32.totalorder %s523_s25, %s2661_s30  ;;  %s2666_s0 = sshll.u32 %s2756_s17, 4  ;;  %s2667_s0 = int_to_ptr.vmem [resolvable:$false] %s2666_s0 }
  0x62   : > { %s2668_s24 = scalar_lea.vmem %s2667_s0, 32  ;;  %p2669_p9 = scmp.lt.s32.totalorder %s523_s25, %s2667_s0 }
  0x63   : > { %p2664_p8 = pnand %p2662_p1, %p2650_p10  ;;  %p2670_p11 = scmp.lt.s32.totalorder %s2668_s24, %s2661_s30 }
  0x65   : > { %p2665_p5 = pneg %p2664_p8  ;;  %p2671_p6 = por %p2670_p11, %p2669_p9 }
  0x67   : > { %p2672_p3 = pnand %p2671_p6, %p2665_p5 }
  0x69   : > { %2675 = shalt.err (!%p2672_p3)
}
  0x6a   : > { %2429 = dma.hbm_to_vmem [thread:$0]  (!%p2984_p7), %s2980_s10, 16, %s523_s25, %s513_s11  }
  0x6b   : > { %p3382_p13 = scmp.ne.s32.totalorder %s3369_s28, 0 }
  0x6c   : > { %s3005_s23 = sand.u32 (!%p3382_p13), 1, %s2740_s22   ;;  %p3383_p1 = scmp.ne.s32.totalorder (!%p3382_p13), %s3378_s29, 0 }
  0x6d   : > { %531 = sbr.rel (%p3382_p13) target bundleno = 2251 (0x8cb), region = 84  ;;  %s534_s16 = scalar_lea.sflag (!%p3382_p13), [#allocation3], %s3005_s23 }
  0x6e   : > { %s536_s4 = scalar_lea.vmem (!%p3382_p13), [#allocation2], %s3005_s23 }
  0x72   : > { %2719 = dma.done.wait (%p3383_p1), %s534_s16, 16  }
  0x73   : > { %2721 = vsyncadd (%p3383_p1), %s534_s16, 4294967280  ;;  %p3384_p3 = scmp.eq.s32.totalorder %s2874_s27, 0 }
  0x75   : > { %2723 = dma.done.wait (%p3384_p3), [#allocation6], 512   ;;  %p3385_p4 = pmov %p3384_p3 }
  0x76   : > { %p3386_p6 = pmov %p3384_p3 }
  0x77   : > { %2725 = vsyncadd (%p3385_p4), [#allocation6], 4294966784 }
  0x78   : > { %2727 = dma.done.wait (%p3386_p6), [#allocation9], 272   ;;  %p3387_p5 = pmov %p3384_p3 }
  0x79   : > { %p605_p8 = scmp.lt.s32.totalorder %s2874_s27, 1  ;;  %v2757_v0 = vmov 0.0   ;;  %vm2758_vm0 = vmmov 0   ;;  %s3388_s0 = sld [smem:[#allocation20_spill]]  ;;  %v2492_v1 = vld [vmem:[%s3336_s2 + $0x8] sm:$0xff]   ;;  %v2493_v2 = vld [vmem:[%s3336_s2] sm:$0xff]   ;;  %v816_v60 = vlaneseq }
  0x7a   : > { %2729 = vsyncadd (%p3387_p5), [#allocation9], 4294967024  ;;  %2253 = vmatprep.subr.bf16.mxu1 %v2757_v0  ;;  %2257 = vmatprep.mubr.msk.bf16.mxu1 %vm2758_vm0, %v2757_v0  ;;  %v2496_v6 = vld [vmem:[#allocation7 + $0x8] sm:$0xff]   ;;  %vm638_vm1 = vcmask 261120   ;;  %v2494_v7 = vld [vmem:[#allocation5 + $0x8] sm:$0xff]   ;;  %vm832_vm2 = vcmask 64512  }
  0x7b   : > { %s606_s10 = scalar_select %p605_p8, %s2874_s27, 1  ;;  %2269 = vmatprep.subr.bf16.mxu0 %v2757_v0  ;;  %2273 = vmatprep.mubr.msk.bf16.mxu0 %vm2758_vm0, %v2757_v0  ;;  %v2497_v8 = vld [vmem:[#allocation7] sm:$0xff]   ;;  %v2495_v9 = vld [vmem:[#allocation5] sm:$0xff]   ;;  %v2152_v15 = vld [vmem:[%s3337_s3] ss:$0 sm:$0xff]  ;;  %vm893_vm3 = vcmask 1045504  }
  0x7c   : > { %2254 = vmatpush3.bf16.msra.mxu1 %v2492_v1  ;;  %2270 = vmatpush3.bf16.msra.mxu0 %v2496_v6  ;;  %v2156_v16 = vld [vmem:[%s3339_s5] ss:$0 sm:$0xff]  ;;  %s2761_s24 = smov 104   ;;  %v817_v61 = vshrl.u32 %v816_v60, 7  ;;  %v819_v62 = vand.u32 127, %v816_v60  ;;  %vm879_vm5 = vcmask 97280  }
  0x7d   : > { %s2202_s11 = sshll.u32 %s606_s10, 4  ;;  %2255 = vmatprep.subr.bf16.mxu1 %v2757_v0  ;;  %2271 = vmatprep.subr.bf16.mxu0 %v2757_v0  ;;  %s2759_s10 = smov 112   ;;  %v2160_v31 = vld [vmem:[%s3341_s7] ss:$0 sm:$0xff]  ;;  %vm1285_vm7 = vcmask 130048   ;;  %vm1287_vm8 = vcmask 195584  }
  0x7e   : > { %v2165_v39 = vld [vmem:[%s536_s4] ss:$0 sm:$0xff]  ;;  %v820_v63 = vsub.s32 %v817_v61, %v819_v62  ;;  %s2763_s4 = smov 8   ;;  %s2764_s25 = smov 16   ;;  %vm1909_vm9 = vcmask 523264  }
  0x7f   : > { %s609_s29 = scalar_lea.vmem %s3388_s0, %s2202_s11  ;;  %s2760_s11 = smov 120  }
  0x80   : > { %v3038_v3 = vld [vmem:[%s609_s29] sm:$0xff]  ;;  %v3040_v4 = vld [vmem:[%s609_s29 + $0x8] sm:$0xff]  ;;  %2256 = vmatpush3.bf16.msra.mxu1 %v2493_v2  ;;  %2272 = vmatpush3.bf16.msra.mxu0 %v2497_v8  ;;  %s2762_s29 = smov 124   ;;  %v822_v1 = vsub.s32 0, %v820_v63  ;;  %s2765_s18 = smov 24  }
  0x81   : > { %v614_v5 = vpack.c.bf16 %v3040_v4, %v3038_v3  ;;  %2261 = vmatprep.subr.bf16.mxu1 %v2757_v0  ;;  %2283 = vmatprep.subr.bf16.mxu0 %v2757_v0  ;;  %s2149_s20 = sshll.u32 %s3005_s23, 4  ;;  %s3389_s16 = sld [smem:[#allocation25_spill]] }
  0x82   : > { %v2164_v2 = vmin.u32 %v822_v1, %v820_v63  ;;  %p3391_p10 = scmp.ne.s32.totalorder %s3379_s19, 0  ;;  %s2766_s6 = smov [#allocation11]  }
  0x83   : > { %2258 = vmatmul.mubr.msk.bf16.vlgmr.msra.gmra.mxu1 %vm638_vm1, %v614_v5  ;;  %2274 = vmatmul.mubr.msk.bf16.vlgmr.msra.gmra.mxu0 %vm638_vm1, %v614_v5  ;;  %s2680_s15 = sshll.u32 %s2766_s6, 4  ;;  %s2681_s15 = int_to_ptr.vmem [resolvable:$false] %s2680_s15 }
  0x84   : > { %2262 = vmatpush3.bf16.msra.mxu1 %v2494_v7  ;;  %2265 = vmatprep.mubr.msk.bf16.mxu1 %vm2758_vm0, %v2757_v0  ;;  %vm824_vm4 = vcmp.le.s32.totalorder %v2164_v2, 4 }
  0x85   : > { %2263 = vmatprep.subr.bf16.mxu1 %v2757_v0  ;;  %2285 = vmatprep.mubr.msk.bf16.mxu0 %vm2758_vm0, %v2757_v0 }
  0x88   : > { %2264 = vmatpush3.bf16.msra.mxu1 %v2495_v9 }
  0x89   : > { %2277 = vmatprep.subr.bf16.mxu1 %v2757_v0 }
  0x8b   : > { %2266 = vmatmul.mubr.msk.bf16.vlgmr.msra.gmra.mxu1 %vm638_vm1, %v614_v5  ;;  %v831_v5 = vsel %vm824_vm4, %v2165_v39, -1e+09 }
  0x8c   : > { %2279 = vmatprep.mubr.msk.bf16.mxu1 %vm2758_vm0, %v2757_v0 }
 0x143   : > { %v676_v10 = vpop.f32.mrf.mxu1  ;;  %v806_v32 = vpop.f32.mrf.mxu0 }
 0x144   : > { %v677_v20 = vadd.f32 %v2152_v15, %v676_v10  ;;  %v807_v34 = vadd.f32 %v2160_v31, %v806_v32 }
 0x145   : > { %v2259_v11 = vpop.f32.mrf.mxu1  ;;  %v2275_v33 = vpop.f32.mrf.mxu0 }
 0x146   : > { %v683_v26 = vmul.f32 0.35355338, %v677_v20 }
 0x147   : > { %v679_v12 = vpop.f32.mrf.mxu1  ;;  %v809_v35 = vpop.f32.mrf.mxu0 }
 0x148   : > { %v680_v18 = vadd.f32 %v2152_v15, %v679_v12  ;;  %v810_v36 = vadd.f32 %v2160_v31, %v809_v35 }
 0x149   : > { %v2260_v13 = vpop.f32.mrf.mxu1  ;;  %v2276_v37 = vpop.f32.mrf.mxu0 }
 0x14a   : > { %v684_v24 = vmul.f32 0.35355338, %v680_v18  ;;  %v3085_v38 = vpack.c.bf16 %v810_v36, %v807_v34 }
 0x14b   : > { %v742_v14 = vpop.f32.mrf.mxu1 }
 0x14c   : > { %v743_v21 = vadd.f32 %v2156_v16, %v742_v14  ;;  %v813_v28 = vpack.c.bf16 %v684_v24, %v683_v26  ;;  %v895_v40 = vsel %vm893_vm3, %v3085_v38, 0 }
 0x14d   : > { %v2267_v17 = vpop.f32.mrf.mxu1  ;;  %2284 = vmatpush3.bf16.msra.mxu0 %v895_v40 }
 0x14e   : > { %v1300_v29 = vrot.slane %v813_v28, 4  ;;  %2295 = vmatprep.subr.bf16.mxu0 %v2757_v0  ;;  %v1290_v17 = vadd.s32 4, %v819_v62 }
 0x14f   : > { %v745_v19 = vpop.f32.mrf.mxu1 }
 0x150   : > { %v746_v22 = vadd.f32 %v2156_v16, %v745_v19  ;;  %v1289_v16 = vadd.s32 8, %v817_v61 }
 0x151   : > { %v2268_v23 = vpop.f32.mrf.mxu1 }
 0x152   : > { %v814_v25 = vpack.c.bf16 %v746_v22, %v743_v21  ;;  %v1291_v20 = vsub.s32 %v1289_v16, %v1290_v17 }
 0x154   : > { %1054 = vrot.lane.b32.xlu1 %v814_v25, %s2759_s10  ;;  %943 = vrot.lane.b32.xlu0 %v814_v25, %s2760_s11  ;;  %v837_v27 = vsel %vm832_vm2, %v814_v25, 0  ;;  %v1301_v30 = vrot.slane %v814_v25, 2 }
 0x155   : > { %2278 = vmatpush3.bf16.xpose.msra.mxu1 %v837_v27 }
 0x156   : > { %2289 = vmatprep.subr.bf16.mxu1 %v2757_v0  ;;  %v1306_v50 = vsel %vm832_vm2, %v1301_v30, 0 }
 0x158   : > { %1052 = vrot.lane.b32.xlu1 %v813_v28, %s2759_s10  ;;  %940 = vrot.lane.b32.xlu0 %v813_v28, %s2760_s11 }
 0x15c   : > { %1162 = vrot.lane.b32.xlu1 %v813_v28, %s2761_s24  ;;  %1164 = vrot.lane.b32.xlu0 %v814_v25, %s2761_s24  ;;  %v1293_v25 = vsub.s32 0, %v1291_v20 }
 0x15d   : > { %2280 = vmatmul.mubr.msk.bf16.vlgmr.msra.gmra.mxu1 %vm832_vm2, %v813_v28 }
 0x15e   : > { %2291 = vmatprep.mubr.msk.bf16.mxu1 %vm2758_vm0, %v2757_v0  ;;  %v2174_v28 = vmin.u32 %v1293_v25, %v1291_v20 }
 0x160   : > { %1407 = vrot.lane.b32.xlu1 %v1300_v29, %s2760_s11  ;;  %1409 = vrot.lane.b32.xlu0 %v1301_v30, %s2760_s11  ;;  %vm1295_vm6 = vcmp.le.s32.totalorder %v2174_v28, 4 }
 0x164   : > { %1517 = vrot.lane.b32.xlu1 %v1300_v29, %s2759_s10  ;;  %1519 = vrot.lane.b32.xlu0 %v1301_v30, %s2759_s10 }
 0x168   : > { %1627 = vrot.lane.b32.xlu1 %v1300_v29, %s2761_s24  ;;  %1629 = vrot.lane.b32.xlu0 %v1301_v30, %s2761_s24 }
 0x16c   : > { %1002 = vrot.lane.b32.xlu1 %v3085_v38, %s2760_s11  ;;  %1296 = vrot.lane.b32.xlu0 %v2165_v39, %s2762_s29  ;;  %s3390_s29 = sld [smem:[#allocation26_spill]] }
 0x170   : > { %1112 = vrot.lane.b32.xlu0 %v3085_v38, %s2759_s10 }
 0x1c6   : > { %v944_v41 = vpop.permute.xlu0 %943  ;;  %v1055_v43 = vpop.permute.xlu1 %1054 }
 0x1c7   : > { %v949_v42 = vsel %vm832_vm2, %v944_v41, 0  ;;  %v1060_v45 = vsel %vm832_vm2, %v1055_v43, 0 }
 0x1c8   : > { %2290 = vmatpush3.bf16.xpose.msra.mxu1 %v949_v42 }
 0x1c9   : > { %2301 = vmatprep.subr.bf16.mxu1 %v2757_v0 }
 0x1ca   : > { %v941_v44 = vpop.permute.xlu0 %940  ;;  %v1053_v47 = vpop.permute.xlu1 %1052 }
 0x1ce   : > { %v1165_v46 = vpop.permute.xlu0 %1164  ;;  %v1163_v49 = vpop.permute.xlu1 %1162 }
 0x1cf   : > { %2292 = vmatmul.mubr.msk.bf16.vlgmr.msra.gmra.mxu1 %vm832_vm2, %v941_v44  ;;  %v1170_v48 = vsel %vm832_vm2, %v1165_v46, 0 }
 0x1d0   : > { %2302 = vmatpush3.bf16.xpose.msra.mxu1 %v1060_v45  ;;  %2303 = vmatprep.mubr.msk.bf16.mxu1 %vm2758_vm0, %v2757_v0 }
 0x1d1   : > { %2313 = vmatprep.subr.bf16.mxu1 %v2757_v0 }
 0x1d2   : > { %v1410_v51 = vpop.permute.xlu0 %1409  ;;  %v1408_v54 = vpop.permute.xlu1 %1407 }
 0x1d3   : > { %v1415_v52 = vsel %vm832_vm2, %v1410_v51, 0 }
 0x1d6   : > { %v1520_v53 = vpop.permute.xlu0 %1519  ;;  %v1518_v57 = vpop.permute.xlu1 %1517 }
 0x1d7   : > { %2304 = vmatmul.mubr.msk.bf16.vlgmr.msra.gmra.mxu1 %vm832_vm2, %v1053_v47  ;;  %v1525_v55 = vsel %vm832_vm2, %v1520_v53, 0 }
 0x1d8   : > { %2314 = vmatpush3.bf16.xpose.msra.mxu1 %v1170_v48  ;;  %2315 = vmatprep.mubr.msk.bf16.mxu1 %vm2758_vm0, %v2757_v0 }
 0x1d9   : > { %2325 = vmatprep.subr.bf16.mxu1 %v2757_v0 }
 0x1da   : > { %v1630_v56 = vpop.permute.xlu0 %1629  ;;  %v1628_v59 = vpop.permute.xlu1 %1627 }
 0x1db   : > { %v1635_v58 = vsel %vm832_vm2, %v1630_v56, 0 }
 0x1de   : > { %v1297_v33 = vpop.permute.xlu0 %1296  ;;  %v1003_v35 = vpop.permute.xlu1 %1002 }
 0x1df   : > { %2316 = vmatmul.mubr.msk.bf16.vlgmr.msra.gmra.mxu1 %vm832_vm2, %v1163_v49  ;;  %v1299_v37 = vsel %vm1295_vm6, %v1297_v33, -1e+09 }
 0x1e0   : > { %2326 = vmatpush3.bf16.xpose.msra.mxu1 %v1306_v50  ;;  %2327 = vmatprep.mubr.msk.bf16.mxu1 %vm2758_vm0, %v2757_v0 }
 0x1e1   : > { %2337 = vmatprep.subr.bf16.mxu1 %v2757_v0 }
 0x1e7   : > { %2328 = vmatmul.mubr.msk.bf16.vlgmr.msra.gmra.mxu1 %vm832_vm2, %v1300_v29 }
 0x1e8   : > { %2338 = vmatpush3.bf16.xpose.msra.mxu1 %v1415_v52  ;;  %2339 = vmatprep.mubr.msk.bf16.mxu1 %vm2758_vm0, %v2757_v0  ;;  %v3153_v52 = vrot.slane %v3085_v38, 2 }
 0x1e9   : > { %2349 = vmatprep.subr.bf16.mxu1 %v2757_v0 }
 0x1ef   : > { %2340 = vmatmul.mubr.msk.bf16.vlgmr.msra.gmra.mxu1 %vm832_vm2, %v1408_v54 }
 0x1f0   : > { %2350 = vmatpush3.bf16.xpose.msra.mxu1 %v1525_v55  ;;  %2351 = vmatprep.mubr.msk.bf16.mxu1 %vm2758_vm0, %v2757_v0 }
 0x1f1   : > { %2361 = vmatprep.subr.bf16.mxu1 %v2757_v0 }
 0x1f7   : > { %2352 = vmatmul.mubr.msk.bf16.vlgmr.msra.gmra.mxu1 %vm832_vm2, %v1518_v57 }
 0x1f8   : > { %2362 = vmatpush3.bf16.xpose.msra.mxu1 %v1635_v58  ;;  %2363 = vmatprep.mubr.msk.bf16.mxu1 %vm2758_vm0, %v2757_v0 }
 0x1f9   : > { %2373 = vmatprep.subr.bf16.mxu1 %v2757_v0 }
 0x1ff   : > { %2364 = vmatmul.mubr.msk.bf16.vlgmr.msra.gmra.mxu1 %vm832_vm2, %v1628_v59  ;;  %v1008_v59 = vsel %vm893_vm3, %v1003_v35, 0  ;;  %v1363_v35 = vsel %vm893_vm3, %v3153_v52, 0 }
 0x200   : > { %2377 = vmatprep.mubr.msk.bf16.mxu1 %vm2758_vm0, %v2757_v0 }
 0x21d   : > { %v873_v6 = vpop.f32.mrf.mxu1 }
 0x21e   : > { %v874_v7 = vadd.f32 %v873_v6, %v831_v5 }
 0x21f   : > { %v2281_v8 = vpop.f32.mrf.mxu1 }
 0x220   : > { %v880_v9 = vsel %vm879_vm5, %v874_v7, -inf }
 0x221   : > { %881 = vmax.xlane.f32.xlu1 %v880_v9  ;;  %v876_v10 = vpop.f32.mrf.mxu1  ;;  %v1113_v9 = vpop.permute.xlu0 %1112 }
 0x223   : > { %v2282_v11 = vpop.f32.mrf.mxu1 }
 0x28f   : > { %v985_v12 = vpop.f32.mrf.mxu1 }
 0x290   : > { %v3132_v13 = vadd.f32 %v985_v12, %v831_v5 }
 0x291   : > { %v2293_v14 = vpop.f32.mrf.mxu1 }
 0x292   : > { %v991_v15 = vsel %vm879_vm5, %v3132_v13, -inf }
 0x293   : > { %992 = vmax.xlane.f32.xlu0 %v991_v15  ;;  %v988_v18 = vpop.f32.mrf.mxu1 }
 0x295   : > { %v2294_v19 = vpop.f32.mrf.mxu1 }
 0x297   : > { %v1096_v21 = vpop.f32.mrf.mxu1 }
 0x298   : > { %v3136_v22 = vadd.f32 %v1096_v21, %v831_v5 }
 0x299   : > { %v2305_v23 = vpop.f32.mrf.mxu1 }
 0x29a   : > { %v1102_v24 = vsel %vm879_vm5, %v3136_v22, -inf  ;;  %v1118_v23 = vsel %vm893_vm3, %v1113_v9, 0 }
 0x29b   : > { %1103 = vmax.xlane.f32.xlu0 %v1102_v24  ;;  %v1099_v26 = vpop.f32.mrf.mxu1 }
 0x29d   : > { %v2306_v27 = vpop.f32.mrf.mxu1 }
 0x29f   : > { %v1206_v29 = vpop.f32.mrf.mxu1 }
 0x2a0   : > { %v3140_v30 = vadd.f32 %v1206_v29, %v831_v5 }
 0x2a1   : > { %v2317_v31 = vpop.f32.mrf.mxu1 }
 0x2a2   : > { %v1212_v32 = vsel %vm879_vm5, %v3140_v30, -inf }
 0x2a3   : > { %1213 = vmax.xlane.f32.xlu1 %v1212_v32  ;;  %v1209_v34 = vpop.f32.mrf.mxu1 }
 0x2a5   : > { %v2318_v36 = vpop.f32.mrf.mxu1 }
 0x2a7   : > { %v1342_v39 = vpop.f32.mrf.mxu1 }
 0x2a8   : > { %v3144_v40 = vadd.f32 %v1342_v39, %v1299_v37 }
 0x2a9   : > { %v2329_v41 = vpop.f32.mrf.mxu1 }
 0x2aa   : > { %v882_v42 = vpop.xlane.xlu1 %881  ;;  %v1348_v43 = vsel %vm879_vm5, %v3144_v40, -inf }
 0x2ab   : > { %v883_v44 = vsub.f32 %v874_v7, %v882_v42  ;;  %1349 = vmax.xlane.f32.xlu0 %v1348_v43  ;;  %v1345_v45 = vpop.f32.mrf.mxu1 }
 0x2ad   : > { %v884_v46 = vmul.f32 1.442695, %v883_v44  ;;  %v2330_v47 = vpop.f32.mrf.mxu1 }
 0x2af   : > { %2504 = vpow2.f32 %v884_v46  ;;  %v1451_v48 = vpop.f32.mrf.mxu1 }
 0x2b0   : > { %v3148_v49 = vadd.f32 %v1451_v48, %v1299_v37 }
 0x2b1   : > { %v2341_v50 = vpop.f32.mrf.mxu1 }
 0x2b2   : > { %v1457_v51 = vsel %vm879_vm5, %v3148_v49, -inf }
 0x2b3   : > { %1458 = vmax.xlane.f32.xlu0 %v1457_v51  ;;  %v1454_v53 = vpop.f32.mrf.mxu1 }
 0x2b4   : > { %1467 = vrot.lane.b32.xlu1 %v3153_v52, %s2760_s11  ;;  %s604_s11 = scalar_lea.vmem [#allocation11], %s2149_s20  ;;  %s2682_s20 = scalar_lea.vmem %s2681_s15, 512 }
 0x2b5   : > { %v2342_v54 = vpop.f32.mrf.mxu1 }
 0x2b7   : > { %v1561_v55 = vpop.f32.mrf.mxu1 }
 0x2b8   : > { %v3168_v5 = vadd.f32 %v1561_v55, %v1299_v37 }
 0x2b9   : > { %v2353_v56 = vpop.f32.mrf.mxu1 }
 0x2ba   : > { %v1567_v6 = vsel %vm879_vm5, %v3168_v5, -inf }
 0x2bb   : > { %v1564_v57 = vpop.f32.mrf.mxu1 }
 0x2bc   : > { %v3157_v58 = vpop.eup %2504 }
 0x2bd   : > { %v2354_v60 = vpop.f32.mrf.mxu1  ;;  %v889_v61 = vpack.c.bf16 %v3157_v58, %v3157_v58  ;;  %v886_v45 = vsel %vm879_vm5, %v3157_v58, 0.0 }
 0x2bf   : > { %2286 = vmatmul.mubr.msk.bf16.vlgmr.msra.gmra.mxu0 %vm879_vm5, %v889_v61  ;;  %v1671_v62 = vpop.f32.mrf.mxu1 }
 0x2c0   : > { %2296 = vmatpush3.bf16.msra.mxu0 %v1008_v59  ;;  %2297 = vmatprep.mubr.msk.bf16.mxu0 %vm2758_vm0, %v2757_v0  ;;  %v3172_v7 = vadd.f32 %v1671_v62, %v1299_v37 }
 0x2c1   : > { %v2365_v63 = vpop.f32.mrf.mxu1  ;;  %2307 = vmatprep.subr.bf16.mxu0 %v2757_v0 }
 0x2c2   : > { %v1677_v8 = vsel %vm879_vm5, %v3172_v7, -inf }
 0x2c3   : > { %v1674_v1 = vpop.f32.mrf.mxu1 }
 0x2c5   : > { %v2366_v2 = vpop.f32.mrf.mxu1 }
 0x2c9   : > { %1222 = vrot.lane.b32.xlu0 %v3085_v38, %s2761_s24 }
 0x2d8   : > { %1568 = vmax.xlane.f32.xlu1 %v1567_v6 }
 0x2e8   : > { %1678 = vmax.xlane.f32.xlu0 %v1677_v8 }
 0x2e9   : > { %1687 = vrot.lane.b32.xlu1 %v3153_v52, %s2761_s24  ;;  %s2016_s24 = sshll.u32 %s604_s11, 4  ;;  %s3289_s24 = int_to_ptr.vmem [resolvable:$true] %s2016_s24 }
 0x2ea   : > { %p2683_p2 = scmp.lt.s32.totalorder %s3289_s24, %s2681_s15 }
 0x2fe   : > { %1577 = vrot.lane.b32.xlu0 %v3153_v52, %s2759_s10  ;;  %s2203_s10 = sshll.u32 %s2874_s27, 8  ;;  %s2676_s27 = scalar_lea.vmem %s3289_s24, 256 }
 0x2ff   : > { %p2677_p7 = scmp.ne.s32.totalorder %s3289_s24, %s2676_s27  ;;  %p2684_p9 = scmp.lt.s32.totalorder %s2682_s20, %s2676_s27 }
 0x301   : > { %p2678_p0 = pnand %p2677_p7, %p3391_p10  ;;  %p2685_p11 = por %p2684_p9, %p2683_p2 }
 0x303   : > { %p2679_p12 = pneg %p2678_p0 }
 0x305   : > { %p2686_p13 = pnand %p2685_p11, %p2679_p12 }
 0x31c   : > { %v993_v38 = vpop.xlane.xlu0 %992 }
 0x31d   : > { %v994_v10 = vsub.f32 %v3132_v13, %v993_v38 }
 0x31f   : > { %v995_v11 = vmul.f32 1.442695, %v994_v10 }
 0x321   : > { %2506 = vpow2.f32 %v995_v11 }
 0x324   : > { %v1104_v12 = vpop.xlane.xlu0 %1103 }
 0x325   : > { %v1105_v14 = vsub.f32 %v3136_v22, %v1104_v12 }
 0x327   : > { %v1106_v15 = vmul.f32 1.442695, %v1105_v14 }
 0x329   : > { %2508 = vpow2.f32 %v1106_v15 }
 0x32c   : > { %v1214_v16 = vpop.xlane.xlu1 %1213 }
 0x32d   : > { %v1215_v17 = vsub.f32 %v3140_v30, %v1214_v16 }
 0x32e   : > { %v2507_v18 = vpop.eup %2506 }
 0x32f   : > { %v1216_v19 = vmul.f32 1.442695, %v1215_v17  ;;  %v997_v20 = vsel %vm879_vm5, %v2507_v18, 0.0  ;;  %v1000_v21 = vpack.c.bf16 %v2507_v18, %v2507_v18 }
 0x330   : > { %998 = vadd.xlane.f32.xlu1 %v997_v20  ;;  %v1468_v37 = vpop.permute.xlu1 %1467 }
 0x331   : > { %2298 = vmatmul.mubr.msk.bf16.vlgmr.msra.gmra.mxu0 %vm879_vm5, %v1000_v21  ;;  %2510 = vpow2.f32 %v1216_v19 }
 0x332   : > { %2308 = vmatpush3.bf16.msra.mxu0 %v1118_v23  ;;  %2309 = vmatprep.mubr.msk.bf16.mxu0 %vm2758_vm0, %v2757_v0 }
 0x333   : > { %2319 = vmatprep.subr.bf16.mxu0 %v2757_v0 }
 0x334   : > { %v1350_v13 = vpop.xlane.xlu0 %1349 }
 0x335   : > { %v1351_v22 = vsub.f32 %v3144_v40, %v1350_v13  ;;  %v1473_v40 = vsel %vm893_vm3, %v1468_v37, 0 }
 0x336   : > { %v2509_v24 = vpop.eup %2508 }
 0x337   : > { %v1352_v25 = vmul.f32 1.442695, %v1351_v22  ;;  %v1108_v26 = vsel %vm879_vm5, %v2509_v24, 0.0  ;;  %v1111_v27 = vpack.c.bf16 %v2509_v24, %v2509_v24 }
 0x338   : > { %1109 = vadd.xlane.f32.xlu1 %v1108_v26 }
 0x339   : > { %2310 = vmatmul.mubr.msk.bf16.vlgmr.msra.gmra.mxu0 %vm879_vm5, %v1111_v27  ;;  %2512 = vpow2.f32 %v1352_v25 }
 0x33a   : > { %2321 = vmatprep.mubr.msk.bf16.mxu0 %vm2758_vm0, %v2757_v0 }
 0x33c   : > { %v1459_v28 = vpop.xlane.xlu0 %1458 }
 0x33d   : > { %v1460_v29 = vsub.f32 %v3148_v49, %v1459_v28 }
 0x33e   : > { %v2511_v31 = vpop.eup %2510 }
 0x33f   : > { %v1461_v30 = vmul.f32 1.442695, %v1460_v29  ;;  %v1221_v34 = vpack.c.bf16 %v2511_v31, %v2511_v31  ;;  %v1218_v43 = vsel %vm879_vm5, %v2511_v31, 0.0 }
 0x340   : > { %v1223_v32 = vpop.permute.xlu0 %1222 }
 0x341   : > { %2514 = vpow2.f32 %v1461_v30  ;;  %v1228_v33 = vsel %vm893_vm3, %v1223_v32, 0 }
 0x342   : > { %2320 = vmatpush3.bf16.msra.mxu0 %v1228_v33 }
 0x343   : > { %2331 = vmatprep.subr.bf16.mxu0 %v2757_v0 }
 0x345   : > { %2322 = vmatmul.mubr.msk.bf16.vlgmr.msra.gmra.mxu0 %vm879_vm5, %v1221_v34 }
 0x346   : > { %2332 = vmatpush3.bf16.msra.mxu0 %v1363_v35  ;;  %2333 = vmatprep.mubr.msk.bf16.mxu0 %vm2758_vm0, %v2757_v0  ;;  %v2513_v36 = vpop.eup %2512 }
 0x347   : > { %2343 = vmatprep.subr.bf16.mxu0 %v2757_v0  ;;  %v1357_v39 = vpack.c.bf16 %v2513_v36, %v2513_v36 }
 0x34d   : > { %2334 = vmatmul.mubr.msk.bf16.vlgmr.msra.gmra.mxu0 %vm879_vm5, %v1357_v39 }
 0x34e   : > { %v2515_v41 = vpop.eup %2514  ;;  %2344 = vmatpush3.bf16.msra.mxu0 %v1473_v40  ;;  %2345 = vmatprep.mubr.msk.bf16.mxu0 %vm2758_vm0, %v2757_v0 }
 0x34f   : > { %v1463_v42 = vsel %vm879_vm5, %v2515_v41, 0.0  ;;  %2355 = vmatprep.subr.bf16.mxu0 %v2757_v0  ;;  %v1466_v44 = vpack.c.bf16 %v2515_v41, %v2515_v41 }
 0x350   : > { %1464 = vadd.xlane.f32.xlu0 %v1463_v42 }
 0x354   : > { %1219 = vadd.xlane.f32.xlu0 %v1218_v43 }
 0x355   : > { %2346 = vmatmul.mubr.msk.bf16.vlgmr.msra.gmra.mxu0 %vm879_vm5, %v1466_v44 }
 0x356   : > { %2357 = vmatprep.mubr.msk.bf16.mxu0 %vm2758_vm0, %v2757_v0 }
 0x358   : > { %887 = vadd.xlane.f32.xlu0 %v886_v45 }
 0x361   : > { %v1569_v46 = vpop.xlane.xlu1 %1568 }
 0x362   : > { %v1570_v47 = vsub.f32 %v3168_v5, %v1569_v46  ;;  %v1354_v5 = vsel %vm879_vm5, %v2513_v36, 0.0 }
 0x364   : > { %v1571_v48 = vmul.f32 1.442695, %v1570_v47 }
 0x365   : > { %v1688_v56 = vpop.permute.xlu1 %1687 }
 0x366   : > { %2516 = vpow2.f32 %v1571_v48  ;;  %v1693_v58 = vsel %vm893_vm3, %v1688_v56, 0 }
 0x371   : > { %v1679_v49 = vpop.xlane.xlu0 %1678 }
 0x372   : > { %v1680_v50 = vsub.f32 %v3172_v7, %v1679_v49 }
 0x373   : > { %v2517_v51 = vpop.eup %2516 }
 0x374   : > { %v1681_v52 = vmul.f32 1.442695, %v1680_v50  ;;  %v1573_v53 = vsel %vm879_vm5, %v2517_v51, 0.0  ;;  %v1576_v57 = vpack.c.bf16 %v2517_v51, %v2517_v51 }
 0x375   : > { %1574 = vadd.xlane.f32.xlu1 %v1573_v53  ;;  %v1578_v54 = vpop.permute.xlu0 %1577 }
 0x376   : > { %2518 = vpow2.f32 %v1681_v52  ;;  %v1583_v55 = vsel %vm893_vm3, %v1578_v54, 0 }
 0x377   : > { %2356 = vmatpush3.bf16.msra.mxu0 %v1583_v55 }
 0x378   : > { %2367 = vmatprep.subr.bf16.mxu0 %v2757_v0 }
 0x37a   : > { %2358 = vmatmul.mubr.msk.bf16.vlgmr.msra.gmra.mxu0 %vm879_vm5, %v1576_v57 }
 0x37b   : > { %2368 = vmatpush3.bf16.msra.mxu0 %v1693_v58  ;;  %2369 = vmatprep.mubr.msk.bf16.mxu0 %vm2758_vm0, %v2757_v0 }
 0x37c   : > { %2381 = vmatprep.subr.bf16.mxu0 %v2757_v0 }
 0x37f   : > { %v3225_v59 = vpop.f32.mrf.mxu0 }
 0x381   : > { %v2287_v60 = vpop.f32.mrf.mxu0 }
 0x383   : > { %v2519_v61 = vpop.eup %2518  ;;  %v934_v62 = vpop.f32.mrf.mxu0 }
 0x384   : > { %v1683_v63 = vsel %vm879_vm5, %v2519_v61, 0.0  ;;  %v1686_v1 = vpack.c.bf16 %v2519_v61, %v2519_v61 }
 0x385   : > { %v2288_v2 = vpop.f32.mrf.mxu0  ;;  %1684 = vadd.xlane.f32.xlu1 %v1683_v63 }
 0x386   : > { %2370 = vmatmul.mubr.msk.bf16.vlgmr.msra.gmra.mxu0 %vm879_vm5, %v1686_v1 }
 0x387   : > { %2389 = vmatprep.mubr.msk.bf16.mxu0 %vm2758_vm0, %v2757_v0 }
 0x389   : > { %1355 = vadd.xlane.f32.xlu1 %v1354_v5 }
 0x3b9   : > { %v999_v6 = vpop.xlane.xlu1 %998 }
 0x3ba   : > { %2520 = vrcp.f32 %v999_v6 }
 0x3c1   : > { %v1110_v7 = vpop.xlane.xlu1 %1109 }
 0x3c2   : > { %2522 = vrcp.f32 %v1110_v7 }
 0x3c7   : > { %v2521_v8 = vpop.eup %2520 }
 0x3cf   : > { %v2523_v14 = vpop.eup %2522 }
 0x3d9   : > { %v1465_v20 = vpop.xlane.xlu0 %1464 }
 0x3da   : > { %2524 = vrcp.f32 %v1465_v20 }
 0x3dd   : > { %v1220_v13 = vpop.xlane.xlu0 %1219 }
 0x3de   : > { %2526 = vrcp.f32 %v1220_v13  ;;  %v2500_v13 = vld [vmem:[%s3346_s12 + $0x18] sm:$0xff]  }
 0x3df   : > { %2382 = vmatpush3.bf16.msra.mxu0 %v2500_v13 }
 0x3e0   : > { %2383 = vmatprep.subr.bf16.mxu0 %v2757_v0 }
 0x3e1   : > { %v888_v52 = vpop.xlane.xlu0 %887 }
 0x3e7   : > { %v2525_v29 = vpop.eup %2524 }
 0x3eb   : > { %v2527_v33 = vpop.eup %2526 }
 0x3f1   : > { %v1044_v9 = vpop.f32.mrf.mxu0 }
 0x3f2   : > { %v1051_v38 = vmul.f32 %v2521_v8, %v1044_v9 }
 0x3f3   : > { %v2299_v10 = vpop.f32.mrf.mxu0 }
 0x3f4   : > { %1273 = vrot.lane.b32.xlu0 %v1051_v38, %s2763_s4 }
 0x3f5   : > { %v1047_v11 = vpop.f32.mrf.mxu0 }
 0x3f7   : > { %v2300_v12 = vpop.f32.mrf.mxu0 }
 0x3f9   : > { %v1154_v15 = vpop.f32.mrf.mxu0 }
 0x3fa   : > { %v1161_v16 = vmul.f32 %v2523_v14, %v1154_v15 }
 0x3fb   : > { %v2311_v17 = vpop.f32.mrf.mxu0 }
 0x3fc   : > { %1277 = vrot.lane.b32.xlu1 %v1161_v16, %s2764_s25 }
 0x3fd   : > { %v1157_v18 = vpop.f32.mrf.mxu0 }
 0x3fe   : > { %v1575_v37 = vpop.xlane.xlu1 %1574 }
 0x3ff   : > { %v2312_v19 = vpop.f32.mrf.mxu0  ;;  %2528 = vrcp.f32 %v1575_v37 }
 0x405   : > { %v1264_v21 = vpop.f32.mrf.mxu0 }
 0x406   : > { %v1271_v35 = vmul.f32 %v2527_v33, %v1264_v21 }
 0x407   : > { %v2323_v23 = vpop.f32.mrf.mxu0 }
 0x408   : > { %v2498_v23 = vld [vmem:[#allocation8 + $0x8] sm:$0xff]  }
 0x409   : > { %v1267_v22 = vpop.f32.mrf.mxu0  ;;  %2374 = vmatpush3.bf16.msra.mxu1 %v2498_v23 }
 0x40a   : > { %2375 = vmatprep.subr.bf16.mxu1 %v2757_v0 }
 0x40b   : > { %v2324_v24 = vpop.f32.mrf.mxu0 }
 0x40c   : > { %v2529_v40 = vpop.eup %2528 }
 0x40d   : > { %v1399_v25 = vpop.f32.mrf.mxu0 }
 0x40e   : > { %v1685_v39 = vpop.xlane.xlu1 %1684 }
 0x40f   : > { %v2335_v26 = vpop.f32.mrf.mxu0  ;;  %2530 = vrcp.f32 %v1685_v39 }
 0x410   : > { %2532 = vrcp.f32 %v888_v52 }
 0x411   : > { %v1402_v27 = vpop.f32.mrf.mxu0 }
 0x412   : > { %v1356_v53 = vpop.xlane.xlu1 %1355 }
 0x413   : > { %v2336_v28 = vpop.f32.mrf.mxu0  ;;  %2534 = vrcp.f32 %v1356_v53 }
 0x415   : > { %v1509_v30 = vpop.f32.mrf.mxu0 }
 0x416   : > { %v1516_v31 = vmul.f32 %v2525_v29, %v1509_v30 }
 0x417   : > { %v2347_v32 = vpop.f32.mrf.mxu0 }
 0x418   : > { %1738 = vrot.lane.b32.xlu1 %v1516_v31, %s2763_s4  ;;  %v2183_v31 = vld [vmem:[%s3342_s8] ss:$0 sm:$0xff] }
 0x419   : > { %v1512_v34 = vpop.f32.mrf.mxu0 }
 0x41b   : > { %v2348_v36 = vpop.f32.mrf.mxu0 }
 0x41c   : > { %1281 = vrot.lane.b32.xlu1 %v1271_v35, %s2765_s18  ;;  %v2531_v46 = vpop.eup %2530  ;;  %v2184_v35 = vld [vmem:[%s3343_s9] ss:$0 sm:$0xff] }
 0x41d   : > { %v2533_v55 = vpop.eup %2532 }
 0x41e   : > { %v938_v58 = vmul.f32 %v2533_v55, %v3225_v59 }
 0x420   : > { %v2535_v5 = vpop.eup %2534 }
 0x421   : > { %v1406_v7 = vmul.f32 %v2535_v5, %v1399_v25 }
 0x43a   : > { %v1619_v41 = vpop.f32.mrf.mxu0 }
 0x43b   : > { %v1626_v42 = vmul.f32 %v2529_v40, %v1619_v41  ;;  %v2501_v41 = vld [vmem:[%s3346_s12 + $0x10] sm:$0xff]  }
 0x43c   : > { %v2359_v43 = vpop.f32.mrf.mxu0  ;;  %2384 = vmatpush3.bf16.msra.mxu0 %v2501_v41 }
 0x43d   : > { %1742 = vrot.lane.b32.xlu0 %v1626_v42, %s2764_s25  ;;  %2385 = vmatprep.subr.bf16.mxu0 %v2757_v0  ;;  %v2502_v42 = vld [vmem:[%s3346_s12 + $0x8] sm:$0xff]   ;;  %v2503_v43 = vld [vmem:[%s3346_s12] sm:$0xff]   ;;  %s3287_s25 = scalar_lea.hbm %s3390_s29, %s2203_s10 }
 0x43e   : > { %v1622_v44 = vpop.f32.mrf.mxu0 }
 0x43f   : > { %v2185_v44 = vld [vmem:[#allocation10] ss:$0 sm:$0xff] }
 0x440   : > { %v2360_v45 = vpop.f32.mrf.mxu0  ;;  %2386 = vmatpush3.bf16.msra.mxu0 %v2502_v42 }
 0x441   : > { %2387 = vmatprep.subr.bf16.mxu0 %v2757_v0  ;;  %v2189_v0 = vld [vmem:[%s3347_s13] ss:$0 sm:$0xff] }
 0x444   : > { %2388 = vmatpush3.bf16.msra.mxu0 %v2503_v43 }
 0x446   : > { %v1729_v47 = vpop.f32.mrf.mxu0 }
 0x447   : > { %v1736_v48 = vmul.f32 %v2531_v46, %v1729_v47 }
 0x448   : > { %v2371_v49 = vpop.f32.mrf.mxu0 }
 0x449   : > { %1746 = vrot.lane.b32.xlu0 %v1736_v48, %s2765_s18  ;;  %s2003_s18 = scalar_lea.sflag [#allocation4], %s3005_s23 }
 0x44a   : > { %v1732_v50 = vpop.f32.mrf.mxu0 }
 0x44c   : > { %v2372_v51 = vpop.f32.mrf.mxu0 }
 0x466   : > { %v1274_v56 = vpop.permute.xlu0 %1273 }
 0x467   : > { %v1284_v60 = vsel %vm832_vm2, %v938_v58, %v1274_v56 }
 0x46e   : > { %v1278_v54 = vpop.permute.xlu1 %1277 }
 0x46f   : > { %v1286_v61 = vsel %vm1285_vm7, %v1284_v60, %v1278_v54 }
 0x48a   : > { %v1739_v57 = vpop.permute.xlu1 %1738 }
 0x48b   : > { %v1749_v8 = vsel %vm832_vm2, %v1406_v7, %v1739_v57 }
 0x48e   : > { %v1282_v62 = vpop.permute.xlu1 %1281 }
 0x48f   : > { %v1288_v63 = vsel %vm1287_vm8, %v1286_v61, %v1282_v62 }
 0x490   : > { %v1752_v1 = vadd.f32 %v1288_v63, %v3038_v3 }
 0x492   : > { %v1756_v2 = vsel %vm638_vm1, %v1752_v1, 0.0 }
 0x493   : > { %1757 = vadd.xlane.f32.xlu1 %v1756_v2 }
 0x4af   : > { %v1743_v6 = vpop.permute.xlu0 %1742 }
 0x4b0   : > { %v1750_v9 = vsel %vm1285_vm7, %v1749_v8, %v1743_v6 }
 0x4bb   : > { %v1747_v59 = vpop.permute.xlu0 %1746 }
 0x4bc   : > { %v1751_v38 = vsel %vm1287_vm8, %v1750_v9, %v1747_v59 }
 0x4bd   : > { %v1753_v10 = vadd.f32 %v1751_v38, %v3040_v4  ;;  %v2499_v4 = vld [vmem:[#allocation8] sm:$0xff]  }
 0x4be   : > { %2376 = vmatpush3.bf16.msra.mxu1 %v2499_v4 }
 0x4bf   : > { %v1759_v11 = vsel %vm638_vm1, %v1753_v10, 0.0 }
 0x4c0   : > { %1760 = vadd.xlane.f32.xlu0 %v1759_v11 }
 0x51c   : > { %v1758_v12 = vpop.xlane.xlu1 %1757 }
 0x51d   : > { %v1763_v14 = vmul.f32 0.03125, %v1758_v12 }
 0x51f   : > { %v1765_v3 = vsub.f32 %v1752_v1, %v1763_v14 }
 0x521   : > { %v1767_v15 = vmul.f32 %v1765_v3, %v1765_v3 }
 0x523   : > { %v1769_v16 = vsel %vm638_vm1, %v1767_v15, 0.0 }
 0x524   : > { %1770 = vadd.xlane.f32.xlu0 %v1769_v16 }
 0x549   : > { %v1761_v17 = vpop.xlane.xlu0 %1760 }
 0x54a   : > { %v1764_v18 = vmul.f32 0.03125, %v1761_v17 }
 0x54c   : > { %v1766_v19 = vsub.f32 %v1753_v10, %v1764_v18 }
 0x54e   : > { %v1768_v20 = vmul.f32 %v1766_v19, %v1766_v19 }
 0x550   : > { %v1772_v21 = vsel %vm638_vm1, %v1768_v20, 0.0 }
 0x551   : > { %1773 = vadd.xlane.f32.xlu1 %v1772_v21  ;;  %v2196_v21 = vld [vmem:[%s3389_s16] ss:$0 sm:$0xff] }
 0x5ad   : > { %v1771_v22 = vpop.xlane.xlu0 %1770 }
 0x5ae   : > { %v1775_v24 = vmul.f32 0.03125, %v1771_v22 }
 0x5b0   : > { %v1777_v25 = vadd.f32 1e-05, %v1775_v24 }
 0x5b2   : > { %2536 = vrsqrt.f32 %v1777_v25 }
 0x5bf   : > { %v2537_v29 = vpop.eup %2536 }
 0x5c0   : > { %v1781_v30 = vmul.f32 %v2537_v29, %v1765_v3 }
 0x5c2   : > { %v1789_v34 = vmul.f32 %v2183_v31, %v1781_v30 }
 0x5c4   : > { %v1797_v37 = vadd.f32 %v2184_v35, %v1789_v34 }
 0x5da   : > { %v1774_v26 = vpop.xlane.xlu1 %1773 }
 0x5db   : > { %v1776_v27 = vmul.f32 0.03125, %v1774_v26 }
 0x5dd   : > { %v1778_v28 = vadd.f32 1e-05, %v1776_v27 }
 0x5df   : > { %2538 = vrsqrt.f32 %v1778_v28 }
 0x5ec   : > { %v2539_v32 = vpop.eup %2538 }
 0x5ed   : > { %v1782_v33 = vmul.f32 %v2539_v32, %v1766_v19  ;;  %v2195_v19 = vld [vmem:[%s3348_s14] ss:$0 sm:$0xff] }
 0x5ef   : > { %v1790_v36 = vmul.f32 %v2183_v31, %v1782_v33 }
 0x5f1   : > { %v1798_v39 = vadd.f32 %v2184_v35, %v1790_v36 }
 0x5f3   : > { %v1799_v40 = vpack.c.bf16 %v1798_v39, %v1797_v37 }
 0x5f5   : > { %2378 = vmatmul.mubr.msk.bf16.vlgmr.msra.gmra.mxu1 %vm638_vm1, %v1799_v40 }
 0x6b5   : > { %v1860_v45 = vpop.f32.mrf.mxu1 }
 0x6b6   : > { %v1861_v47 = vadd.f32 %v2185_v44, %v1860_v45 }
 0x6b7   : > { %v2379_v46 = vpop.f32.mrf.mxu1 }
 0x6b8   : > { %v1867_v51 = vmax.f32 %v1861_v47, 0.0 }
 0x6b9   : > { %v1863_v48 = vpop.f32.mrf.mxu1 }
 0x6ba   : > { %v1864_v49 = vadd.f32 %v2185_v44, %v1863_v48 }
 0x6bb   : > { %v2380_v50 = vpop.f32.mrf.mxu1 }
 0x6bc   : > { %v1868_v52 = vmax.f32 %v1864_v49, 0.0 }
 0x6be   : > { %v1869_v53 = vpack.c.bf16 %v1868_v52, %v1867_v51 }
 0x6c0   : > { %2390 = vmatmul.mubr.msk.bf16.vlgmr.msra.gmra.mxu0 %vm1909_vm9, %v1869_v53 }
 0x780   : > { %v1947_v54 = vpop.f32.mrf.mxu0 }
 0x781   : > { %v1948_v55 = vadd.f32 %v2189_v0, %v1947_v54 }
 0x782   : > { %v2391_v56 = vpop.f32.mrf.mxu0 }
 0x783   : > { %v1954_v57 = vadd.f32 %v1948_v55, %v1797_v37 }
 0x784   : > { %v1950_v58 = vpop.f32.mrf.mxu0 }
 0x785   : > { %v1951_v60 = vadd.f32 %v2189_v0, %v1950_v58  ;;  %v1958_v61 = vsel %vm638_vm1, %v1954_v57, 0.0 }
 0x786   : > { %1959 = vadd.xlane.f32.xlu0 %v1958_v61  ;;  %v2392_v62 = vpop.f32.mrf.mxu0 }
 0x787   : > { %v1955_v63 = vadd.f32 %v1951_v60, %v1798_v39 }
 0x789   : > { %v1961_v1 = vsel %vm638_vm1, %v1955_v63, 0.0 }
 0x78a   : > { %1962 = vadd.xlane.f32.xlu1 %v1961_v1 }
 0x80f   : > { %v1960_v2 = vpop.xlane.xlu0 %1959 }
 0x810   : > { %v1964_v5 = vmul.f32 0.03125, %v1960_v2 }
 0x812   : > { %v1966_v6 = vsub.f32 %v1954_v57, %v1964_v5 }
 0x813   : > { %v1963_v7 = vpop.xlane.xlu1 %1962 }
 0x814   : > { %v1965_v8 = vmul.f32 0.03125, %v1963_v7  ;;  %v1968_v9 = vmul.f32 %v1966_v6, %v1966_v6 }
 0x816   : > { %v1967_v59 = vsub.f32 %v1955_v63, %v1965_v8  ;;  %v1970_v38 = vsel %vm638_vm1, %v1968_v9, 0.0 }
 0x817   : > { %1971 = vadd.xlane.f32.xlu0 %v1970_v38 }
 0x818   : > { %v1969_v10 = vmul.f32 %v1967_v59, %v1967_v59 }
 0x81a   : > { %v1973_v11 = vsel %vm638_vm1, %v1969_v10, 0.0 }
 0x81b   : > { %1974 = vadd.xlane.f32.xlu1 %v1973_v11 }
 0x8a0   : > { %v1972_v12 = vpop.xlane.xlu0 %1971 }
 0x8a1   : > { %v1976_v14 = vmul.f32 0.03125, %v1972_v12 }
 0x8a3   : > { %v1978_v3 = vadd.f32 1e-05, %v1976_v14 }
 0x8a4   : > { %v1975_v15 = vpop.xlane.xlu1 %1974 }
 0x8a5   : > { %2540 = vrsqrt.f32 %v1978_v3  ;;  %v1977_v16 = vmul.f32 0.03125, %v1975_v15 }
 0x8a7   : > { %v1979_v17 = vadd.f32 1e-05, %v1977_v16 }
 0x8a9   : > { %2542 = vrsqrt.f32 %v1979_v17 }
 0x8b2   : > { %v2541_v18 = vpop.eup %2540 }
 0x8b3   : > { %v1982_v20 = vmul.f32 %v2541_v18, %v1966_v6 }
 0x8b5   : > { %v1990_v23 = vmul.f32 %v2195_v19, %v1982_v20 }
 0x8b6   : > { %v2543_v4 = vpop.eup %2542 }
 0x8b7   : > { %v1998_v13 = vadd.f32 %v2196_v21, %v1990_v23  ;;  %v1983_v22 = vmul.f32 %v2543_v4, %v1967_v59 }
 0x8b9   : > { %v1991_v24 = vmul.f32 %v2195_v19, %v1983_v22  ;;  %2000 = vst.msk [vmem:[%s604_s11] sm:$0xff] %vm638_vm1, %v1998_v13 }
 0x8bb   : > { %v1999_v25 = vadd.f32 %v2196_v21, %v1991_v24 }
 0x8bd   : > { %2001 = vst.msk [vmem:[%s604_s11 + $0x8] sm:$0xff] %vm638_vm1, %v1999_v25 }
 0x8be   : > { %2689 = shalt.err (!%p2686_p13)
}
 0x8bf   : > { %s2690_s30 = scalar_lea.hbm %s3287_s25, 256  ;;  %s2694_s10 = scalar_lea.hbm %s3390_s29, 512 }
 0x8c0   : > { %p2691_p1 = scmp.ne.s32.totalorder %s3287_s25, %s2690_s30  ;;  %p2695_p6 = scmp.lt.s32.totalorder %s3287_s25, %s3390_s29 }
 0x8c1   : > { %p2696_p5 = scmp.lt.s32.totalorder %s2694_s10, %s2690_s30 }
 0x8c2   : > { %p2692_p3 = pnand %p2691_p1, %p3391_p10 }
 0x8c3   : > { %p2697_p8 = por %p2696_p5, %p2695_p6 }
 0x8c4   : > { %p2693_p4 = pneg %p2692_p3 }
 0x8c6   : > { %p2698_p7 = pnand %p2697_p8, %p2693_p4 }
 0x8c8   : > { %2701 = shalt.err (!%p2698_p7)
}
 0x8c9   : > { %s2767_s0 = smov 128  }
 0x8ca   : > { %2411 = dma.vmem_to_hbm [thread:$0]  (%p3391_p10), %s3289_s24, 256, %s3287_s25, %s2003_s18, %s2767_s0, %s2767_s0, %s2763_s4  }
 0x8cb PF: > { %s3392_s27 = sld [smem:[#allocation17_spill]]  ;;  %s2031_s6 = sand.u32 1, %s2736_s21  }
 0x8cc   : > { %p3393_p0 = scmp.ne.s32.totalorder %s3380_s26, 0  ;;  %s2032_s15 = scalar_lea.sflag [#allocation4], %s2031_s6 }
 0x8d1   : > { %p3394_p12 = scmp.ge.s32.totalorder %s3392_s27, 2 }
 0x8d3   : > { %p2431_p2 = pnand %p3394_p12, %p3393_p0 }
 0x8d5   : > { %p2432_p9 = pneg %p2431_p2 }
 0x8d7   : > { %2731 = dma.done.wait (%p2432_p9), %s2032_s15, 256  }
 0x8d8   : > { %2733 = vsyncadd (%p2432_p9), %s2032_s15, 4294967040  ;;  %s3395_s24 = sld [smem:[#allocation18_spill]]  ;;  %s3398_s21 = smov %s2740_s22 }
 0x8d9   : > { %s3396_s19 = sld [smem:[#allocation16_spill]] }
 0x8da   : > { %s3397_s23 = sld [smem:[#allocation19_spill]] }
 0x8de   : > { %p31_p11 = scmp.ge.s32.totalorder %s3395_s24, 4  }
 0x8df   : > { %s3399_s22 = smov %s3396_s19 }
 0x8e0   :  { %33 = sbr.rel (!%p31_p11) target bundleno = 15 (0xf), region = 148 }
 0x8e5   :  { %2037 = vsyncpa [#allocation3], 1 }
 0x8e6   :  { %2039 = vsyncpa [#allocation3 + $0x1], 1 }
 0x8e7   :  { %2040 = vsyncpa [#allocation6], 1 }
 0x8e8   :  { %2041 = vsyncpa [#allocation9], 1 }
 0x8e9   :  { %2042 = vsyncpa [#allocation4], 1 }
 0x8ea   :  { %2044 = vsyncpa [#allocation4 + $0x1], 1 }

</bundles_post_ra>
